<compile_context>
chip_gen: v7x
topology: tpu7x:2x2x1
jax: 0.10.0
libtpu: 0.0.40
codegen_flags: <defaults>
</compile_context>

<pallas_src>
import functools

import numpy as np
import jax
import jax.numpy as jnp
from jax import lax
from jax.experimental import pallas as pl
from jax.experimental.pallas import tpu as pltpu


def _drcrn_kernel(neg_inv_sig2, n_crep, n_outcome, batch, tb,
                  conf_ref, sc_ref,
                  w_rep1_ref, b_rep1_ref, w_rep2_ref, b_rep2_ref,
                  w_head1_ref, b_head1_ref, w_head2_ref, b_head2_ref,
                  out_ref, mmd_ref,
                  xall_ref, xsqrow_ref, mw_ref, acc_ref):
    i = pl.program_id(0)

    def dense(xin, w_ref, b_ref, relu=False):
        y = jnp.dot(xin, w_ref[...], preferred_element_type=jnp.float32) + b_ref[...]
        return jnp.maximum(y, 0.0) if relu else y

    # ---- step 0: full-batch conf_rep (Gram columns), squared norms, masks ----
    @pl.when(i == 0)
    def _init():
        conf_all = conf_ref[...]                                    # [Bp, n_in]
        h_all = dense(conf_all, w_rep1_ref, b_rep1_ref, relu=True)
        rep_all = dense(h_all, w_rep2_ref, b_rep2_ref)[:, :n_crep]  # [Bp, n_crep]
        xall_ref[...] = rep_all.astype(jnp.bfloat16)
        y = rep_all * rep_all
        # Row-vector of squared norms produced on the MXU (no XLU transpose).
        xsqrow_ref[...] = lax.dot_general(
            jnp.ones((1, n_crep), jnp.float32), y,
            dimension_numbers=(((1,), (1,)), ((), ())),
            preferred_element_type=jnp.float32)                     # [1, Bp]
        sc_all = sc_ref[...]
        rows = lax.broadcasted_iota(jnp.int32, sc_all.shape, 0)
        valid = (rows < batch).astype(jnp.float32)                  # zero-pad rows masked out
        mt_all = valid * (sc_all == 1.0).astype(jnp.float32)
        mw_ref[...] = jnp.concatenate([mt_all, valid - mt_all], axis=1)   # [Bp, 2]
        acc_ref[...] = jnp.zeros_like(acc_ref)

    # ---- per row-block fused MLP ----
    start = pl.multiple_of(i * tb, 8)
    conf_t = conf_ref[pl.ds(start, tb), :]
    sc_t = sc_ref[pl.ds(start, tb), :]

    h1 = dense(conf_t, w_rep1_ref, b_rep1_ref, relu=True)   # conf -> [h1c | h1o]
    comb = dense(h1, w_rep2_ref, b_rep2_ref)                # -> combined rep
    crep = comb[:, :n_crep]
    h2 = dense(comb, w_head1_ref, b_head1_ref, relu=True)   # -> [hp | h0 | h1]
    heads = dense(h2, w_head2_ref, b_head2_ref)             # -> [logits | o0 | o1]
    logits = heads[:, :2]
    o0 = heads[:, 2:2 + n_outcome]
    o1 = heads[:, 2 + n_outcome:2 + 2 * n_outcome]

    mx = jnp.max(logits, axis=-1, keepdims=True)
    logp = logits - (mx + jnp.log(jnp.sum(jnp.exp(logits - mx),
                                          axis=-1, keepdims=True)))
    outcome = o1 * sc_t + o0 * (1.0 - sc_t)
    treated_f = (sc_t == 1.0).astype(jnp.float32)

    # direct column-range stores (no lane-concatenate temp)
    out_ref[:, :n_outcome] = outcome
    out_ref[:, n_outcome:n_outcome + 2] = logp
    out_ref[:, n_outcome + 2:n_outcome + 3] = treated_f

    # ---- tiled masked RBF-MMD^2 ----
    rows_t = lax.broadcasted_iota(jnp.int32, (tb, 1), 0) + start
    valid_t = (rows_t < batch).astype(jnp.float32)
    mt_t = valid_t * treated_f                      # treated (Xc in mmd2_rbf)
    mc_t = valid_t - mt_t                           # control (Xt in mmd2_rbf)

    xb = crep.astype(jnp.bfloat16)                  # bf16 MXU operand (row side)
    xsq_t = jnp.sum(crep * crep, axis=1, keepdims=True)          # [tb, 1] f32
    gram = lax.dot_general(xb, xall_ref[...],
                           dimension_numbers=(((1,), (1,)), ((), ())),
                           preferred_element_type=jnp.float32)   # [tb, Bp]
    k = jnp.exp((xsq_t + xsqrow_ref[...] - 2.0 * gram) * neg_inv_sig2)
    km = jnp.dot(k, mw_ref[...], preferred_element_type=jnp.float32)   # [tb, 2]
    kt = km[:, 0:1]                                 # K @ mt
    kc = km[:, 1:2]                                 # K @ mc

    # actual diagonal of the bf16 kernel matrix (replicated on the VPU), so the
    # self-similarity correction stays exact even though diag(K) != 1 in bf16.
    xbf = xb.astype(jnp.float32)
    self_dot = jnp.sum(xbf * xbf, axis=1, keepdims=True)
    diag_k = jnp.exp((2.0 * xsq_t - 2.0 * self_dot) * neg_inv_sig2)

    contrib = jnp.concatenate(
        [mt_t * kt,        # -> mt^T K mt  (treated-treated, diag included)
         mc_t * kc,        # -> mc^T K mc
         mt_t * kc,        # -> mt^T K mc
         mt_t * diag_k,    # -> sum of treated diagonal
         mc_t * diag_k],   # -> sum of control diagonal
        axis=1)
    acc_ref[...] += jnp.sum(contrib, axis=0, keepdims=True)      # [1, 5]

    # ---- finalize on the last row block ----
    @pl.when(i == pl.num_programs(0) - 1)
    def _finalize():
        acc = acc_ref[...]
        s_cc = acc[:, 0:1]
        s_tt = acc[:, 1:2]
        s_ct = acc[:, 2:3]
        d_t = acc[:, 3:4]
        d_c = acc[:, 4:5]
        m = jnp.sum(mw_ref[:, 0:1], keepdims=True)   # number treated
        n = jnp.sum(mw_ref[:, 1:2], keepdims=True)   # number control
        p = 0.5
        den_cc = jnp.maximum(m * (m - 1.0), 1.0)
        den_tt = jnp.maximum(n * (n - 1.0), 1.0)
        den_ct = jnp.maximum(m * n, 1.0)
        mmd = ((1.0 - p) ** 2 / den_cc * (s_cc - d_t)
               + p ** 2 / den_tt * (s_tt - d_c)
               - 2.0 * p * (1.0 - p) / den_ct * s_ct)
        mmd = 4.0 * mmd
        mmd = jnp.where(jnp.logical_or(m < 2.0, n < 2.0),
                        jnp.zeros_like(mmd), mmd)
        mmd_ref[...] = mmd


def _pick_row_block(batch):
    """Row block so ~4 f32 [tb, B_pad] temporaries stay <~16 MiB (v7x-safe)."""
    b8 = max(8, ((batch + 7) // 8) * 8)
    cap = (16 * 1024 * 1024) // (16 * b8)
    cap = max(8, (cap // 8) * 8)
    return int(min(512, cap, b8))


def drcrn_forward(x, params, *, single_cause_index, n_x, n_confounder_rep,
                  n_outcome, mmd_sigma, row_block=None):
    B = x.shape[0]
    # --- glue: extract the single-cause column and drop it from the inputs ---
    sc = x[:, single_cause_index:single_cause_index + 1]
    if single_cause_index == 0:
        conf = x[:, 1:]
    elif single_cause_index in (n_x - 1, -1):
        conf = x[:, :-1]
    else:
        conf = jnp.concatenate(
            [x[:, :single_cause_index], x[:, single_cause_index + 1:]], axis=1)
    assert conf.shape[1] == n_x - 1

    (w1c, b1c, w2c, b2c, w1o, b1o, w2o, b2o,
     wp1, bp1, wp2, bp2, w0a, b0a, w0b, b0b, w1a, b1a, w1b, b1b) = params
    n_crep = w2c.shape[1]
    n_comb = w0a.shape[0]

    # --- fuse shared-input matmuls once (wrapper glue, not in the kernel) ----
    w_rep1 = jnp.concatenate([w1c, w1o], axis=1)            # conf -> [h1c | h1o]
    b_rep1 = jnp.concatenate([b1c, b1o], axis=1)
    w_rep2 = jax.scipy.linalg.block_diag(w2c, w2o)          # -> combined rep
    b_rep2 = jnp.concatenate([b2c, b2o], axis=1)
    # propensity layer-1 reads only conf_rep (first n_crep lanes of `combined`):
    # zero-pad over the outcome-rep rows and fuse with both outcome heads.
    wp1_pad = jnp.concatenate(
        [wp1, jnp.zeros((n_comb - n_crep, wp1.shape[1]), wp1.dtype)], axis=0)
    w_head1 = jnp.concatenate([wp1_pad, w0a, w1a], axis=1)  # combined -> [hp|h0|h1]
    b_head1 = jnp.concatenate([bp1, b0a, b1a], axis=1)
    w_head2 = jax.scipy.linalg.block_diag(wp2, w0b, w1b)    # -> [logits|o0|o1]
    b_head2 = jnp.concatenate([bp2, b0b, b1b], axis=1)

    # --- row-block grid with zero padding (pad rows masked out in-kernel) ---
    tb = (_pick_row_block(B) if row_block is None
          else max(8, ((int(row_block) + 7) // 8) * 8))
    B_pad = ((B + tb - 1) // tb) * tb
    nb = B_pad // tb
    if B_pad != B:
        conf = jnp.pad(conf, ((0, B_pad - B), (0, 0)))
        sc = jnp.pad(sc, ((0, B_pad - B), (0, 0)))

    inputs = (conf, sc, w_rep1, b_rep1, w_rep2, b_rep2,
              w_head1, b_head1, w_head2, b_head2)
    pack_w = n_outcome + 3   # outcome | log-propensity(2) | treated(1)

    # Full-extent blocks with constant index maps: DMA'd once, VMEM-resident.
    full_specs = [pl.BlockSpec(a.shape, lambda i: (0, 0)) for a in inputs]

    kernel = functools.partial(_drcrn_kernel, -1.0 / float(mmd_sigma) ** 2,
                               n_crep, n_outcome, B, tb)
    packed, mmd = pl.pallas_call(
        kernel,
        out_shape=(jax.ShapeDtypeStruct((B_pad, pack_w), jnp.float32),
                   jax.ShapeDtypeStruct((1, 1), jnp.float32)),
        grid=(nb,),
        in_specs=full_specs,
        out_specs=(pl.BlockSpec((tb, pack_w), lambda i: (i, 0)),
                   pl.BlockSpec((1, 1), lambda i: (0, 0))),
        scratch_shapes=[pltpu.VMEM((B_pad, n_crep), jnp.bfloat16),  # bf16 Gram columns
                        pltpu.VMEM((1, B_pad), jnp.float32),        # row of ||x||^2
                        pltpu.VMEM((B_pad, 2), jnp.float32),        # [mt | mc]
                        pltpu.VMEM((1, 5), jnp.float32)],           # partial sums
        compiler_params=pltpu.CompilerParams(
            dimension_semantics=("arbitrary",),
            vmem_limit_bytes=32 * 1024 * 1024),
    )(*inputs)

    outcome = packed[:B, :n_outcome]
    log_prop = packed[:B, n_outcome:n_outcome + 2]
    tlabel = packed[:B, n_outcome + 2:n_outcome + 3].astype(jnp.int32)
    return outcome, log_prop, mmd[0, 0], tlabel


def _make_linear(key, n_in, n_out, scale=0.2):
    kw, kb = jax.random.split(key)
    w = (scale * jax.random.normal(kw, (n_in, n_out))).astype(jnp.float32)
    b = (scale * jax.random.normal(kb, (1, n_out))).astype(jnp.float32)
    return w, b


def make_params(key, n_input, n_confounder_rep, n_outcome_rep, n_outcome):
    keys = jax.random.split(key, 10)
    n_comb = n_confounder_rep + n_outcome_rep
    p = []
    # confounder_rep_net: n_input -> n_input+1 -> ReLU -> n_confounder_rep
    p += _make_linear(keys[0], n_input, n_input + 1)
    p += _make_linear(keys[1], n_input + 1, n_confounder_rep)
    # outcome_rep_net: n_input -> n_input+1 -> ReLU -> n_outcome_rep
    p += _make_linear(keys[2], n_input, n_input + 1)
    p += _make_linear(keys[3], n_input + 1, n_outcome_rep)
    # propensity_net: n_crep -> n_crep+1 -> ReLU -> 2 (LogSoftmax in kernel)
    p += _make_linear(keys[4], n_confounder_rep, n_confounder_rep + 1)
    p += _make_linear(keys[5], n_confounder_rep + 1, 2)
    # outcome_net0 / outcome_net1: n_comb -> n_comb+1 -> ReLU -> n_outcome
    p += _make_linear(keys[6], n_comb, n_comb + 1)
    p += _make_linear(keys[7], n_comb + 1, n_outcome)
    p += _make_linear(keys[8], n_comb, n_comb + 1)
    p += _make_linear(keys[9], n_comb + 1, n_outcome)
    return tuple(p)


def drcrn_reference(x, params, *, single_cause_index, n_x, mmd_sigma):
    """Plain-JAX reference mirroring the PyTorch forward.  The MMD mirrors the
    kernel's compute contract: bf16 Gram (f32 accumulate) and subtraction of
    the actual masked diagonal (equal to subtracting m/n in exact arithmetic)."""
    (w1c, b1c, w2c, b2c, w1o, b1o, w2o, b2o,
     wp1, bp1, wp2, bp2, w0a, b0a, w0b, b0b, w1a, b1a, w1b, b1b) = params
    sc = x[:, single_cause_index:single_cause_index + 1]
    conf = jnp.concatenate(
        [x[:, :single_cause_index], x[:, single_cause_index + 1:]], axis=1)

    def mlp2(xin, w1, b1, w2, b2):
        return jnp.maximum(xin @ w1 + b1, 0.0) @ w2 + b2

    crep = mlp2(conf, w1c, b1c, w2c, b2c)
    orep = mlp2(conf, w1o, b1o, w2o, b2o)
    comb = jnp.concatenate([crep, orep], axis=1)
    logits = mlp2(crep, wp1, bp1, wp2, bp2)
    logp = logits - jax.scipy.special.logsumexp(logits, axis=-1, keepdims=True)
    o0 = mlp2(comb, w0a, b0a, w0b, b0b)
    o1 = mlp2(comb, w1a, b1a, w1b, b1b)
    outcome = o1 * sc + o0 * (1.0 - sc)
    tlabel = (sc == 1.0).astype(jnp.int32)

    xb = crep.astype(jnp.bfloat16)
    gram = lax.dot_general(xb, xb, dimension_numbers=(((1,), (1,)), ((), ())),
                           preferred_element_type=jnp.float32)
    xsq = jnp.sum(crep * crep, axis=1, keepdims=True)
    D = xsq + xsq.T - 2.0 * gram
    K = jnp.exp(-D / (mmd_sigma ** 2))
    diag = jnp.diagonal(K)[:, None]
    mt = (sc == 1.0).astype(jnp.float32)
    mc = 1.0 - mt
    m, n = jnp.sum(mt), jnp.sum(mc)
    scc = jnp.sum(K * (mt * mt.T))
    stt = jnp.sum(K * (mc * mc.T))
    sct = jnp.sum(K * (mt * mc.T))
    dgt = jnp.sum(mt * diag)
    dgc = jnp.sum(mc * diag)
    p = 0.5
    mmd = 4.0 * ((1 - p) ** 2 / (m * (m - 1)) * (scc - dgt)
                 + p ** 2 / (n * (n - 1)) * (stt - dgc)
                 - 2 * p * (1 - p) / (m * n) * sct)
    mmd = jnp.where(jnp.logical_or(m < 2, n < 2), 0.0, mmd)
    return outcome, logp, mmd, tlabel


if __name__ == "__main__":
    # Small shapes that still exercise the tiled path: B=20 with row_block=8
    # gives 3 grid steps including 4 zero-padded (masked-out) rows.
    B = 20
    n_confounder, n_cause = 12, 4
    n_x = n_confounder + n_cause            # 16 input columns
    single_cause_index = 3                  # exercises the middle-column concat path
    n_input = n_x - 1
    n_confounder_rep, n_outcome_rep = 8, 8
    n_outcome = 4
    mmd_sigma = 1.0

    key = jax.random.PRNGKey(0)
    kx, kp = jax.random.split(key)
    x = jax.random.normal(kx, (B, n_x), dtype=jnp.float32)
    # binary treatment column (10 treated / 10 control)
    treat_col = jnp.arange(B, dtype=jnp.float32) % 2.0
    x = x.at[:, single_cause_index].set(treat_col)

    params = make_params(kp, n_input, n_confounder_rep, n_outcome_rep, n_outcome)

    outcome, log_prop, mmd, tlabel = drcrn_forward(
        x, params, single_cause_index=single_cause_index, n_x=n_x,
        n_confounder_rep=n_confounder_rep, n_outcome=n_outcome,
        mmd_sigma=mmd_sigma, row_block=8)
    jax.block_until_ready((outcome, log_prop, mmd, tlabel))

    # cross-check against the plain-JAX reference
    r_out, r_logp, r_mmd, r_tl = drcrn_reference(
        x, params, single_cause_index=single_cause_index, n_x=n_x,
        mmd_sigma=mmd_sigma)
    np.testing.assert_allclose(np.asarray(outcome), np.asarray(r_out),
                               rtol=1e-4, atol=1e-4)
    np.testing.assert_allclose(np.asarray(log_prop), np.asarray(r_logp),
                               rtol=1e-4, atol=1e-4)
    np.testing.assert_allclose(float(mmd), float(r_mmd), rtol=1e-3, atol=1e-4)
    np.testing.assert_array_equal(np.asarray(tlabel), np.asarray(r_tl))

    print("KERNEL_OK")
</pallas_src>

<mosaic_0001>
module attributes {stable_mosaic.version = 11 : i64} {
  func.func @_drcrn_kernel(%arg0: i32, %arg1: memref<24x15xf32, #tpu.memory_space<vmem>>, %arg2: memref<24x1xf32, #tpu.memory_space<vmem>>, %arg3: memref<15x32xf32, #tpu.memory_space<vmem>>, %arg4: memref<1x32xf32, #tpu.memory_space<vmem>>, %arg5: memref<32x16xf32, #tpu.memory_space<vmem>>, %arg6: memref<1x16xf32, #tpu.memory_space<vmem>>, %arg7: memref<16x43xf32, #tpu.memory_space<vmem>>, %arg8: memref<1x43xf32, #tpu.memory_space<vmem>>, %arg9: memref<43x10xf32, #tpu.memory_space<vmem>>, %arg10: memref<1x10xf32, #tpu.memory_space<vmem>>, %arg11: memref<8x7xf32, #tpu.memory_space<vmem>>, %arg12: memref<1x1xf32, #tpu.memory_space<vmem>>, %arg13: memref<24x8xbf16, #tpu.memory_space<vmem>>, %arg14: memref<1x24xf32, #tpu.memory_space<vmem>>, %arg15: memref<24x2xf32, #tpu.memory_space<vmem>>, %arg16: memref<1x5xf32, #tpu.memory_space<vmem>>) attributes {dimension_semantics = [#tpu.dimension_semantics<arbitrary>], iteration_bounds = array<i64: 3>, scalar_prefetch = 0 : i64, scratch_operands = 4 : i64, tpu.core_type = #tpu.core_type<tc>, window_params = [{pipeline_mode = #tpu.pipeline_mode<synchronous>, transform_indices = @transform_0, window_bounds = array<i64: 24, 15>}, {pipeline_mode = #tpu.pipeline_mode<synchronous>, transform_indices = @transform_1, window_bounds = array<i64: 24, 1>}, {pipeline_mode = #tpu.pipeline_mode<synchronous>, transform_indices = @transform_2, window_bounds = array<i64: 15, 32>}, {pipeline_mode = #tpu.pipeline_mode<synchronous>, transform_indices = @transform_3, window_bounds = array<i64: 1, 32>}, {pipeline_mode = #tpu.pipeline_mode<synchronous>, transform_indices = @transform_4, window_bounds = array<i64: 32, 16>}, {pipeline_mode = #tpu.pipeline_mode<synchronous>, transform_indices = @transform_5, window_bounds = array<i64: 1, 16>}, {pipeline_mode = #tpu.pipeline_mode<synchronous>, transform_indices = @transform_6, window_bounds = array<i64: 16, 43>}, {pipeline_mode = #tpu.pipeline_mode<synchronous>, transform_indices = @transform_7, window_bounds = array<i64: 1, 43>}, {pipeline_mode = #tpu.pipeline_mode<synchronous>, transform_indices = @transform_8, window_bounds = array<i64: 43, 10>}, {pipeline_mode = #tpu.pipeline_mode<synchronous>, transform_indices = @transform_9, window_bounds = array<i64: 1, 10>}, {transform_indices = @transform_10, window_bounds = array<i64: 8, 7>}, {pipeline_mode = #tpu.pipeline_mode<synchronous>, transform_indices = @transform_11, window_bounds = array<i64: 1, 1>}]} {
    %c0_i32 = arith.constant 0 : i32
    %0 = arith.cmpi eq, %arg0, %c0_i32 : i32
    %1 = arith.extui %0 : i1 to i32
    %c0_i32_0 = arith.constant 0 : i32
    %2 = arith.cmpi ne, %1, %c0_i32_0 : i32
    scf.if %2 {
      %c0_52 = arith.constant 0 : index
      %c0_53 = arith.constant 0 : index
      %117 = vector.load %arg1[%c0_52, %c0_53] : memref<24x15xf32, #tpu.memory_space<vmem>>, vector<24x15xf32>
      %c0_54 = arith.constant 0 : index
      %c0_55 = arith.constant 0 : index
      %118 = vector.load %arg3[%c0_54, %c0_55] : memref<15x32xf32, #tpu.memory_space<vmem>>, vector<15x32xf32>
      %cst_56 = arith.constant dense<0.000000e+00> : vector<24x32xf32>
      %119 = tpu.matmul %117, %118, %cst_56 {dimension_numbers = #tpu.dot_dimension_numbers<[1], [0], [0], [1], [0, 0, 1, 1], [], []>} : vector<24x15xf32>, vector<15x32xf32>, vector<24x32xf32> -> vector<24x32xf32>
      %c0_57 = arith.constant 0 : index
      %c0_58 = arith.constant 0 : index
      %120 = vector.load %arg4[%c0_57, %c0_58] : memref<1x32xf32, #tpu.memory_space<vmem>>, vector<1x32xf32>
      %121 = vector.broadcast %120 : vector<1x32xf32> to vector<24x32xf32>
      %122 = arith.addf %119, %121 : vector<24x32xf32>
      %cst_59 = arith.constant 0.000000e+00 : f32
      %123 = vector.broadcast %cst_59 : f32 to vector<24x32xf32>
      %124 = arith.maximumf %122, %123 : vector<24x32xf32>
      %c0_60 = arith.constant 0 : index
      %c0_61 = arith.constant 0 : index
      %125 = vector.load %arg5[%c0_60, %c0_61] : memref<32x16xf32, #tpu.memory_space<vmem>>, vector<32x16xf32>
      %cst_62 = arith.constant dense<0.000000e+00> : vector<24x16xf32>
      %126 = tpu.matmul %124, %125, %cst_62 {dimension_numbers = #tpu.dot_dimension_numbers<[1], [0], [0], [1], [0, 0, 1, 1], [], []>} : vector<24x32xf32>, vector<32x16xf32>, vector<24x16xf32> -> vector<24x16xf32>
      %c0_63 = arith.constant 0 : index
      %c0_64 = arith.constant 0 : index
      %127 = vector.load %arg6[%c0_63, %c0_64] : memref<1x16xf32, #tpu.memory_space<vmem>>, vector<1x16xf32>
      %128 = vector.broadcast %127 : vector<1x16xf32> to vector<24x16xf32>
      %129 = arith.addf %126, %128 : vector<24x16xf32>
      %130 = vector.extract_strided_slice %129 {offsets = [0, 0], sizes = [24, 8], strides = [1, 1]} : vector<24x16xf32> to vector<24x8xf32>
      %131 = arith.truncf %130 : vector<24x8xf32> to vector<24x8xbf16>
      %c0_65 = arith.constant 0 : index
      %c0_66 = arith.constant 0 : index
      %132 = vector.load %arg13[%c0_65, %c0_66] : memref<24x8xbf16, #tpu.memory_space<vmem>>, vector<24x8xbf16>
      tpu.vector_store %arg13[%c0_65, %c0_66], %131 {strides = array<i32>} : memref<24x8xbf16, #tpu.memory_space<vmem>>, vector<24x8xbf16>,
      %133 = arith.mulf %130, %130 : vector<24x8xf32>
      %cst_67 = arith.constant 1.000000e+00 : f32
      %134 = vector.broadcast %cst_67 : f32 to vector<1x8xf32>
      %cst_68 = arith.constant dense<0.000000e+00> : vector<1x24xf32>
      %135 = tpu.matmul %134, %133, %cst_68 {dimension_numbers = #tpu.dot_dimension_numbers<[1], [1], [0], [0], [0, 0, 1, 0], [], []>} : vector<1x8xf32>, vector<24x8xf32>, vector<1x24xf32> -> vector<1x24xf32>
      %c0_69 = arith.constant 0 : index
      %c0_70 = arith.constant 0 : index
      %136 = vector.load %arg14[%c0_69, %c0_70] : memref<1x24xf32, #tpu.memory_space<vmem>>, vector<1x24xf32>
      tpu.vector_store %arg14[%c0_69, %c0_70], %135 {strides = array<i32>} : memref<1x24xf32, #tpu.memory_space<vmem>>, vector<1x24xf32>,
      %c0_71 = arith.constant 0 : index
      %c0_72 = arith.constant 0 : index
      %137 = vector.load %arg2[%c0_71, %c0_72] : memref<24x1xf32, #tpu.memory_space<vmem>>, vector<24x1xf32>
      %138 = tpu.iota {dimensions = array<i32: 0>} : vector<24x1xi32>
      %c20_i32_73 = arith.constant 20 : i32
      %139 = vector.broadcast %c20_i32_73 : i32 to vector<24x1xi32>
      %140 = arith.cmpi slt, %138, %139 : vector<24x1xi32>
      %141 = arith.extui %140 : vector<24x1xi1> to vector<24x1xi32>
      %142 = arith.sitofp %141 : vector<24x1xi32> to vector<24x1xf32>
      %cst_74 = arith.constant 1.000000e+00 : f32
      %143 = vector.broadcast %cst_74 : f32 to vector<24x1xf32>
      %144 = arith.cmpf oeq, %137, %143 : vector<24x1xf32>
      %145 = arith.extui %144 : vector<24x1xi1> to vector<24x1xi32>
      %146 = arith.sitofp %145 : vector<24x1xi32> to vector<24x1xf32>
      %147 = arith.mulf %142, %146 : vector<24x1xf32>
      %148 = arith.subf %142, %147 : vector<24x1xf32>
      %149 = tpu.concatenate %147, %148 in 1 : vector<24x1xf32>, vector<24x1xf32> -> vector<24x2xf32>
      %c0_75 = arith.constant 0 : index
      %c0_76 = arith.constant 0 : index
      %150 = vector.load %arg15[%c0_75, %c0_76] : memref<24x2xf32, #tpu.memory_space<vmem>>, vector<24x2xf32>
      tpu.vector_store %arg15[%c0_75, %c0_76], %149 {strides = array<i32>} : memref<24x2xf32, #tpu.memory_space<vmem>>, vector<24x2xf32>,
      %cst_77 = arith.constant 0.000000e+00 : f32
      %151 = vector.broadcast %cst_77 : f32 to vector<1x5xf32>
      %c0_78 = arith.constant 0 : index
      %c0_79 = arith.constant 0 : index
      %152 = vector.load %arg16[%c0_78, %c0_79] : memref<1x5xf32, #tpu.memory_space<vmem>>, vector<1x5xf32>
      tpu.vector_store %arg16[%c0_78, %c0_79], %151 {strides = array<i32>} : memref<1x5xf32, #tpu.memory_space<vmem>>, vector<1x5xf32>,
    } else {
    }
    %c8_i32 = arith.constant 8 : i32
    %3 = arith.muli %arg0, %c8_i32 : i32
    %4 = tpu.assume_multiple %3, 8 : i32
    %5 = arith.index_cast %4 : i32 to index
    %c0 = arith.constant 0 : index
    %6 = vector.load %arg1[%5, %c0] : memref<24x15xf32, #tpu.memory_space<vmem>>, vector<8x15xf32>
    %7 = arith.index_cast %4 : i32 to index
    %c0_1 = arith.constant 0 : index
    %8 = vector.load %arg2[%7, %c0_1] : memref<24x1xf32, #tpu.memory_space<vmem>>, vector<8x1xf32>
    %c0_2 = arith.constant 0 : index
    %c0_3 = arith.constant 0 : index
    %9 = vector.load %arg3[%c0_2, %c0_3] : memref<15x32xf32, #tpu.memory_space<vmem>>, vector<15x32xf32>
    %cst = arith.constant dense<0.000000e+00> : vector<8x32xf32>
    %10 = tpu.matmul %6, %9, %cst {dimension_numbers = #tpu.dot_dimension_numbers<[1], [0], [0], [1], [0, 0, 1, 1], [], []>} : vector<8x15xf32>, vector<15x32xf32>, vector<8x32xf32> -> vector<8x32xf32>
    %c0_4 = arith.constant 0 : index
    %c0_5 = arith.constant 0 : index
    %11 = vector.load %arg4[%c0_4, %c0_5] : memref<1x32xf32, #tpu.memory_space<vmem>>, vector<1x32xf32>
    %12 = vector.broadcast %11 : vector<1x32xf32> to vector<8x32xf32>
    %13 = arith.addf %10, %12 : vector<8x32xf32>
    %cst_6 = arith.constant 0.000000e+00 : f32
    %14 = vector.broadcast %cst_6 : f32 to vector<8x32xf32>
    %15 = arith.maximumf %13, %14 : vector<8x32xf32>
    %c0_7 = arith.constant 0 : index
    %c0_8 = arith.constant 0 : index
    %16 = vector.load %arg5[%c0_7, %c0_8] : memref<32x16xf32, #tpu.memory_space<vmem>>, vector<32x16xf32>
    %cst_9 = arith.constant dense<0.000000e+00> : vector<8x16xf32>
    %17 = tpu.matmul %15, %16, %cst_9 {dimension_numbers = #tpu.dot_dimension_numbers<[1], [0], [0], [1], [0, 0, 1, 1], [], []>} : vector<8x32xf32>, vector<32x16xf32>, vector<8x16xf32> -> vector<8x16xf32>
    %c0_10 = arith.constant 0 : index
    %c0_11 = arith.constant 0 : index
    %18 = vector.load %arg6[%c0_10, %c0_11] : memref<1x16xf32, #tpu.memory_space<vmem>>, vector<1x16xf32>
    %19 = vector.broadcast %18 : vector<1x16xf32> to vector<8x16xf32>
    %20 = arith.addf %17, %19 : vector<8x16xf32>
    %21 = vector.extract_strided_slice %20 {offsets = [0, 0], sizes = [8, 8], strides = [1, 1]} : vector<8x16xf32> to vector<8x8xf32>
    %c0_12 = arith.constant 0 : index
    %c0_13 = arith.constant 0 : index
    %22 = vector.load %arg7[%c0_12, %c0_13] : memref<16x43xf32, #tpu.memory_space<vmem>>, vector<16x43xf32>
    %cst_14 = arith.constant dense<0.000000e+00> : vector<8x43xf32>
    %23 = tpu.matmul %20, %22, %cst_14 {dimension_numbers = #tpu.dot_dimension_numbers<[1], [0], [0], [1], [0, 0, 1, 1], [], []>} : vector<8x16xf32>, vector<16x43xf32>, vector<8x43xf32> -> vector<8x43xf32>
    %c0_15 = arith.constant 0 : index
    %c0_16 = arith.constant 0 : index
    %24 = vector.load %arg8[%c0_15, %c0_16] : memref<1x43xf32, #tpu.memory_space<vmem>>, vector<1x43xf32>
    %25 = vector.broadcast %24 : vector<1x43xf32> to vector<8x43xf32>
    %26 = arith.addf %23, %25 : vector<8x43xf32>
    %cst_17 = arith.constant 0.000000e+00 : f32
    %27 = vector.broadcast %cst_17 : f32 to vector<8x43xf32>
    %28 = arith.maximumf %26, %27 : vector<8x43xf32>
    %c0_18 = arith.constant 0 : index
    %c0_19 = arith.constant 0 : index
    %29 = vector.load %arg9[%c0_18, %c0_19] : memref<43x10xf32, #tpu.memory_space<vmem>>, vector<43x10xf32>
    %cst_20 = arith.constant dense<0.000000e+00> : vector<8x10xf32>
    %30 = tpu.matmul %28, %29, %cst_20 {dimension_numbers = #tpu.dot_dimension_numbers<[1], [0], [0], [1], [0, 0, 1, 1], [], []>} : vector<8x43xf32>, vector<43x10xf32>, vector<8x10xf32> -> vector<8x10xf32>
    %c0_21 = arith.constant 0 : index
    %c0_22 = arith.constant 0 : index
    %31 = vector.load %arg10[%c0_21, %c0_22] : memref<1x10xf32, #tpu.memory_space<vmem>>, vector<1x10xf32>
    %32 = vector.broadcast %31 : vector<1x10xf32> to vector<8x10xf32>
    %33 = arith.addf %30, %32 : vector<8x10xf32>
    %34 = vector.extract_strided_slice %33 {offsets = [0, 0], sizes = [8, 2], strides = [1, 1]} : vector<8x10xf32> to vector<8x2xf32>
    %35 = vector.extract_strided_slice %33 {offsets = [0, 2], sizes = [8, 4], strides = [1, 1]} : vector<8x10xf32> to vector<8x4xf32>
    %36 = vector.extract_strided_slice %33 {offsets = [0, 6], sizes = [8, 4], strides = [1, 1]} : vector<8x10xf32> to vector<8x4xf32>
    %cst_23 = arith.constant dense<0xFF800000> : vector<8xf32>
    %37 = vector.multi_reduction <maximumf>, %34, %cst_23 [1] : vector<8x2xf32> to vector<8xf32>
    %38 = vector.shape_cast %37 : vector<8xf32> to vector<8x1xf32>
    %39 = vector.broadcast %38 : vector<8x1xf32> to vector<8x2xf32>
    %40 = arith.subf %34, %39 : vector<8x2xf32>
    %41 = math.exp %40 : vector<8x2xf32>
    %cst_24 = arith.constant dense<0.000000e+00> : vector<8xf32>
    %42 = vector.multi_reduction <add>, %41, %cst_24 [1] : vector<8x2xf32> to vector<8xf32>
    %43 = vector.shape_cast %42 : vector<8xf32> to vector<8x1xf32>
    %44 = math.log %43 : vector<8x1xf32>
    %45 = arith.addf %38, %44 : vector<8x1xf32>
    %46 = vector.broadcast %45 : vector<8x1xf32> to vector<8x2xf32>
    %47 = arith.subf %34, %46 : vector<8x2xf32>
    %48 = vector.broadcast %8 : vector<8x1xf32> to vector<8x4xf32>
    %49 = arith.mulf %36, %48 : vector<8x4xf32>
    %cst_25 = arith.constant 1.000000e+00 : f32
    %50 = vector.broadcast %cst_25 : f32 to vector<8x1xf32>
    %51 = arith.subf %50, %8 : vector<8x1xf32>
    %52 = vector.broadcast %51 : vector<8x1xf32> to vector<8x4xf32>
    %53 = arith.mulf %35, %52 : vector<8x4xf32>
    %54 = arith.addf %49, %53 : vector<8x4xf32>
    %cst_26 = arith.constant 1.000000e+00 : f32
    %55 = vector.broadcast %cst_26 : f32 to vector<8x1xf32>
    %56 = arith.cmpf oeq, %8, %55 : vector<8x1xf32>
    %57 = arith.extui %56 : vector<8x1xi1> to vector<8x1xi32>
    %58 = arith.sitofp %57 : vector<8x1xi32> to vector<8x1xf32>
    %c0_27 = arith.constant 0 : index
    %c0_28 = arith.constant 0 : index
    %59 = vector.load %arg11[%c0_27, %c0_28] : memref<8x7xf32, #tpu.memory_space<vmem>>, vector<8x4xf32>
    tpu.vector_store %arg11[%c0_27, %c0_28], %54 {strides = array<i32>} : memref<8x7xf32, #tpu.memory_space<vmem>>, vector<8x4xf32>,
    %c0_29 = arith.constant 0 : index
    %c4 = arith.constant 4 : index
    %60 = vector.load %arg11[%c0_29, %c4] : memref<8x7xf32, #tpu.memory_space<vmem>>, vector<8x2xf32>
    tpu.vector_store %arg11[%c0_29, %c4], %47 {strides = array<i32>} : memref<8x7xf32, #tpu.memory_space<vmem>>, vector<8x2xf32>,
    %c0_30 = arith.constant 0 : index
    %c6 = arith.constant 6 : index
    %61 = vector.load %arg11[%c0_30, %c6] : memref<8x7xf32, #tpu.memory_space<vmem>>, vector<8x1xf32>
    tpu.vector_store %arg11[%c0_30, %c6], %58 {strides = array<i32>} : memref<8x7xf32, #tpu.memory_space<vmem>>, vector<8x1xf32>,
    %62 = tpu.iota {dimensions = array<i32: 0>} : vector<8x1xi32>
    %63 = vector.broadcast %4 : i32 to vector<8x1xi32>
    %64 = arith.addi %62, %63 : vector<8x1xi32>
    %c20_i32 = arith.constant 20 : i32
    %65 = vector.broadcast %c20_i32 : i32 to vector<8x1xi32>
    %66 = arith.cmpi slt, %64, %65 : vector<8x1xi32>
    %67 = arith.extui %66 : vector<8x1xi1> to vector<8x1xi32>
    %68 = arith.sitofp %67 : vector<8x1xi32> to vector<8x1xf32>
    %69 = arith.mulf %68, %58 : vector<8x1xf32>
    %70 = arith.subf %68, %69 : vector<8x1xf32>
    %71 = arith.truncf %21 : vector<8x8xf32> to vector<8x8xbf16>
    %72 = arith.mulf %21, %21 : vector<8x8xf32>
    %cst_31 = arith.constant dense<0.000000e+00> : vector<8xf32>
    %73 = vector.multi_reduction <add>, %72, %cst_31 [1] : vector<8x8xf32> to vector<8xf32>
    %74 = vector.shape_cast %73 : vector<8xf32> to vector<8x1xf32>
    %c0_32 = arith.constant 0 : index
    %c0_33 = arith.constant 0 : index
    %75 = vector.load %arg13[%c0_32, %c0_33] : memref<24x8xbf16, #tpu.memory_space<vmem>>, vector<24x8xbf16>
    %cst_34 = arith.constant dense<0.000000e+00> : vector<8x24xf32>
    %76 = tpu.matmul %71, %75, %cst_34 {dimension_numbers = #tpu.dot_dimension_numbers<[1], [1], [0], [0], [0, 0, 1, 0], [], []>} : vector<8x8xbf16>, vector<24x8xbf16>, vector<8x24xf32> -> vector<8x24xf32>
    %c0_35 = arith.constant 0 : index
    %c0_36 = arith.constant 0 : index
    %77 = vector.load %arg14[%c0_35, %c0_36] : memref<1x24xf32, #tpu.memory_space<vmem>>, vector<1x24xf32>
    %78 = vector.broadcast %74 : vector<8x1xf32> to vector<8x24xf32>
    %79 = vector.broadcast %77 : vector<1x24xf32> to vector<8x24xf32>
    %80 = arith.addf %78, %79 : vector<8x24xf32>
    %cst_37 = arith.constant 2.000000e+00 : f32
    %81 = vector.broadcast %cst_37 : f32 to vector<8x24xf32>
    %82 = arith.mulf %81, %76 : vector<8x24xf32>
    %83 = arith.subf %80, %82 : vector<8x24xf32>
    %cst_38 = arith.constant -1.000000e+00 : f32
    %84 = vector.broadcast %cst_38 : f32 to vector<8x24xf32>
    %85 = arith.mulf %83, %84 : vector<8x24xf32>
    %86 = math.exp %85 : vector<8x24xf32>
    %c0_39 = arith.constant 0 : index
    %c0_40 = arith.constant 0 : index
    %87 = vector.load %arg15[%c0_39, %c0_40] : memref<24x2xf32, #tpu.memory_space<vmem>>, vector<24x2xf32>
    %cst_41 = arith.constant dense<0.000000e+00> : vector<8x2xf32>
    %88 = tpu.matmul %86, %87, %cst_41 {dimension_numbers = #tpu.dot_dimension_numbers<[1], [0], [0], [1], [0, 0, 1, 1], [], []>} : vector<8x24xf32>, vector<24x2xf32>, vector<8x2xf32> -> vector<8x2xf32>
    %89 = vector.extract_strided_slice %88 {offsets = [0, 0], sizes = [8, 1], strides = [1, 1]} : vector<8x2xf32> to vector<8x1xf32>
    %90 = vector.extract_strided_slice %88 {offsets = [0, 1], sizes = [8, 1], strides = [1, 1]} : vector<8x2xf32> to vector<8x1xf32>
    %91 = arith.extf %71 : vector<8x8xbf16> to vector<8x8xf32>
    %92 = arith.mulf %91, %91 : vector<8x8xf32>
    %cst_42 = arith.constant dense<0.000000e+00> : vector<8xf32>
    %93 = vector.multi_reduction <add>, %92, %cst_42 [1] : vector<8x8xf32> to vector<8xf32>
    %94 = vector.shape_cast %93 : vector<8xf32> to vector<8x1xf32>
    %cst_43 = arith.constant 2.000000e+00 : f32
    %95 = vector.broadcast %cst_43 : f32 to vector<8x1xf32>
    %96 = arith.mulf %95, %74 : vector<8x1xf32>
    %cst_44 = arith.constant 2.000000e+00 : f32
    %97 = vector.broadcast %cst_44 : f32 to vector<8x1xf32>
    %98 = arith.mulf %97, %94 : vector<8x1xf32>
    %99 = arith.subf %96, %98 : vector<8x1xf32>
    %cst_45 = arith.constant -1.000000e+00 : f32
    %100 = vector.broadcast %cst_45 : f32 to vector<8x1xf32>
    %101 = arith.mulf %99, %100 : vector<8x1xf32>
    %102 = math.exp %101 : vector<8x1xf32>
    %103 = arith.mulf %69, %89 : vector<8x1xf32>
    %104 = arith.mulf %70, %90 : vector<8x1xf32>
    %105 = arith.mulf %69, %90 : vector<8x1xf32>
    %106 = arith.mulf %69, %102 : vector<8x1xf32>
    %107 = arith.mulf %70, %102 : vector<8x1xf32>
    %108 = tpu.concatenate %103, %104, %105, %106, %107 in 1 : vector<8x1xf32>, vector<8x1xf32>, vector<8x1xf32>, vector<8x1xf32>, vector<8x1xf32> -> vector<8x5xf32>
    %c0_46 = arith.constant 0 : index
    %c0_47 = arith.constant 0 : index
    %109 = vector.load %arg16[%c0_46, %c0_47] : memref<1x5xf32, #tpu.memory_space<vmem>>, vector<1x5xf32>
    %cst_48 = arith.constant dense<0.000000e+00> : vector<5xf32>
    %110 = vector.multi_reduction <add>, %108, %cst_48 [0] : vector<8x5xf32> to vector<5xf32>
    %111 = vector.shape_cast %110 : vector<5xf32> to vector<1x5xf32>
    %112 = arith.addf %109, %111 : vector<1x5xf32>
    %c0_49 = arith.constant 0 : index
    %c0_50 = arith.constant 0 : index
    %113 = vector.load %arg16[%c0_49, %c0_50] : memref<1x5xf32, #tpu.memory_space<vmem>>, vector<1x5xf32>
    tpu.vector_store %arg16[%c0_49, %c0_50], %112 {strides = array<i32>} : memref<1x5xf32, #tpu.memory_space<vmem>>, vector<1x5xf32>,
    %c2_i32 = arith.constant 2 : i32
    %114 = arith.cmpi eq, %arg0, %c2_i32 : i32
    %115 = arith.extui %114 : i1 to i32
    %c0_i32_51 = arith.constant 0 : i32
    %116 = arith.cmpi ne, %115, %c0_i32_51 : i32
    scf.if %116 {
      %c0_52 = arith.constant 0 : index
      %c0_53 = arith.constant 0 : index
      %117 = vector.load %arg16[%c0_52, %c0_53] : memref<1x5xf32, #tpu.memory_space<vmem>>, vector<1x5xf32>
      %118 = vector.extract_strided_slice %117 {offsets = [0, 0], sizes = [1, 1], strides = [1, 1]} : vector<1x5xf32> to vector<1x1xf32>
      %119 = vector.extract_strided_slice %117 {offsets = [0, 1], sizes = [1, 1], strides = [1, 1]} : vector<1x5xf32> to vector<1x1xf32>
      %120 = vector.extract_strided_slice %117 {offsets = [0, 2], sizes = [1, 1], strides = [1, 1]} : vector<1x5xf32> to vector<1x1xf32>
      %121 = vector.extract_strided_slice %117 {offsets = [0, 3], sizes = [1, 1], strides = [1, 1]} : vector<1x5xf32> to vector<1x1xf32>
      %122 = vector.extract_strided_slice %117 {offsets = [0, 4], sizes = [1, 1], strides = [1, 1]} : vector<1x5xf32> to vector<1x1xf32>
      %c0_54 = arith.constant 0 : index
      %c0_55 = arith.constant 0 : index
      %123 = vector.load %arg15[%c0_54, %c0_55] : memref<24x2xf32, #tpu.memory_space<vmem>>, vector<24x1xf32>
      %124 = vector.shape_cast %123 : vector<24x1xf32> to vector<1x24x1xf32>
      %cst_56 = arith.constant dense<0.000000e+00> : vector<1xf32>
      %125 = vector.multi_reduction <add>, %124, %cst_56 [1, 2] : vector<1x24x1xf32> to vector<1xf32>
      %126 = vector.shape_cast %125 : vector<1xf32> to vector<1x1x1xf32>
      %127 = vector.extract %126[0, 0, 0] : f32 from vector<1x1x1xf32>
      %128 = vector.broadcast %127 : f32 to vector<1x1xf32>
      %c0_57 = arith.constant 0 : index
      %c1 = arith.constant 1 : index
      %129 = vector.load %arg15[%c0_57, %c1] : memref<24x2xf32, #tpu.memory_space<vmem>>, vector<24x1xf32>
      %130 = vector.shape_cast %129 : vector<24x1xf32> to vector<1x24x1xf32>
      %cst_58 = arith.constant dense<0.000000e+00> : vector<1xf32>
      %131 = vector.multi_reduction <add>, %130, %cst_58 [1, 2] : vector<1x24x1xf32> to vector<1xf32>
      %132 = vector.shape_cast %131 : vector<1xf32> to vector<1x1x1xf32>
      %133 = vector.extract %132[0, 0, 0] : f32 from vector<1x1x1xf32>
      %134 = vector.broadcast %133 : f32 to vector<1x1xf32>
      %cst_59 = arith.constant 1.000000e+00 : f32
      %135 = vector.broadcast %cst_59 : f32 to vector<1x1xf32>
      %136 = arith.subf %128, %135 : vector<1x1xf32>
      %137 = arith.mulf %128, %136 : vector<1x1xf32>
      %cst_60 = arith.constant 1.000000e+00 : f32
      %138 = vector.broadcast %cst_60 : f32 to vector<1x1xf32>
      %139 = arith.maximumf %137, %138 : vector<1x1xf32>
      %cst_61 = arith.constant 1.000000e+00 : f32
      %140 = vector.broadcast %cst_61 : f32 to vector<1x1xf32>
      %141 = arith.subf %134, %140 : vector<1x1xf32>
      %142 = arith.mulf %134, %141 : vector<1x1xf32>
      %cst_62 = arith.constant 1.000000e+00 : f32
      %143 = vector.broadcast %cst_62 : f32 to vector<1x1xf32>
      %144 = arith.maximumf %142, %143 : vector<1x1xf32>
      %145 = arith.mulf %128, %134 : vector<1x1xf32>
      %cst_63 = arith.constant 1.000000e+00 : f32
      %146 = vector.broadcast %cst_63 : f32 to vector<1x1xf32>
      %147 = arith.maximumf %145, %146 : vector<1x1xf32>
      %cst_64 = arith.constant 2.500000e-01 : f32
      %148 = vector.broadcast %cst_64 : f32 to vector<1x1xf32>
      %149 = arith.divf %148, %139 : vector<1x1xf32>
      %150 = arith.subf %118, %121 : vector<1x1xf32>
      %151 = arith.mulf %149, %150 : vector<1x1xf32>
      %cst_65 = arith.constant 2.500000e-01 : f32
      %152 = vector.broadcast %cst_65 : f32 to vector<1x1xf32>
      %153 = arith.divf %152, %144 : vector<1x1xf32>
      %154 = arith.subf %119, %122 : vector<1x1xf32>
      %155 = arith.mulf %153, %154 : vector<1x1xf32>
      %156 = arith.addf %151, %155 : vector<1x1xf32>
      %cst_66 = arith.constant 5.000000e-01 : f32
      %157 = vector.broadcast %cst_66 : f32 to vector<1x1xf32>
      %158 = arith.divf %157, %147 : vector<1x1xf32>
      %159 = arith.mulf %158, %120 : vector<1x1xf32>
      %160 = arith.subf %156, %159 : vector<1x1xf32>
      %cst_67 = arith.constant 4.000000e+00 : f32
      %161 = vector.broadcast %cst_67 : f32 to vector<1x1xf32>
      %162 = arith.mulf %161, %160 : vector<1x1xf32>
      %cst_68 = arith.constant 2.000000e+00 : f32
      %163 = vector.broadcast %cst_68 : f32 to vector<1x1xf32>
      %164 = arith.cmpf olt, %128, %163 : vector<1x1xf32>
      %cst_69 = arith.constant 2.000000e+00 : f32
      %165 = vector.broadcast %cst_69 : f32 to vector<1x1xf32>
      %166 = arith.cmpf olt, %134, %165 : vector<1x1xf32>
      %167 = arith.ori %164, %166 : vector<1x1xi1>
      %cst_70 = arith.constant 0.000000e+00 : f32
      %168 = vector.broadcast %cst_70 : f32 to vector<1x1xf32>
      %169 = arith.select %167, %168, %162 : vector<1x1xi1>, vector<1x1xf32>
      %c0_71 = arith.constant 0 : index
      %c0_72 = arith.constant 0 : index
      %170 = vector.load %arg12[%c0_71, %c0_72] : memref<1x1xf32, #tpu.memory_space<vmem>>, vector<1x1xf32>
      tpu.vector_store %arg12[%c0_71, %c0_72], %169 {strides = array<i32>} : memref<1x1xf32, #tpu.memory_space<vmem>>, vector<1x1xf32>,
    } else {
    }
    return
  }
  func.func @transform_0(%arg0: i32) -> (i32, i32) {
    %c0_i32 = arith.constant 0 : i32
    %c0_i32_0 = arith.constant 0 : i32
    %c0_i32_1 = arith.constant 0 : i32
    return %c0_i32, %c0_i32_0 : i32, i32
  }
  func.func @transform_1(%arg0: i32) -> (i32, i32) {
    %c0_i32 = arith.constant 0 : i32
    %c0_i32_0 = arith.constant 0 : i32
    %c0_i32_1 = arith.constant 0 : i32
    return %c0_i32, %c0_i32_0 : i32, i32
  }
  func.func @transform_2(%arg0: i32) -> (i32, i32) {
    %c0_i32 = arith.constant 0 : i32
    %c0_i32_0 = arith.constant 0 : i32
    %c0_i32_1 = arith.constant 0 : i32
    return %c0_i32, %c0_i32_0 : i32, i32
  }
  func.func @transform_3(%arg0: i32) -> (i32, i32) {
    %c0_i32 = arith.constant 0 : i32
    %c0_i32_0 = arith.constant 0 : i32
    %c0_i32_1 = arith.constant 0 : i32
    return %c0_i32, %c0_i32_0 : i32, i32
  }
  func.func @transform_4(%arg0: i32) -> (i32, i32) {
    %c0_i32 = arith.constant 0 : i32
    %c0_i32_0 = arith.constant 0 : i32
    %c0_i32_1 = arith.constant 0 : i32
    return %c0_i32, %c0_i32_0 : i32, i32
  }
  func.func @transform_5(%arg0: i32) -> (i32, i32) {
    %c0_i32 = arith.constant 0 : i32
    %c0_i32_0 = arith.constant 0 : i32
    %c0_i32_1 = arith.constant 0 : i32
    return %c0_i32, %c0_i32_0 : i32, i32
  }
  func.func @transform_6(%arg0: i32) -> (i32, i32) {
    %c0_i32 = arith.constant 0 : i32
    %c0_i32_0 = arith.constant 0 : i32
    %c0_i32_1 = arith.constant 0 : i32
    return %c0_i32, %c0_i32_0 : i32, i32
  }
  func.func @transform_7(%arg0: i32) -> (i32, i32) {
    %c0_i32 = arith.constant 0 : i32
    %c0_i32_0 = arith.constant 0 : i32
    %c0_i32_1 = arith.constant 0 : i32
    return %c0_i32, %c0_i32_0 : i32, i32
  }
  func.func @transform_8(%arg0: i32) -> (i32, i32) {
    %c0_i32 = arith.constant 0 : i32
    %c0_i32_0 = arith.constant 0 : i32
    %c0_i32_1 = arith.constant 0 : i32
    return %c0_i32, %c0_i32_0 : i32, i32
  }
  func.func @transform_9(%arg0: i32) -> (i32, i32) {
    %c0_i32 = arith.constant 0 : i32
    %c0_i32_0 = arith.constant 0 : i32
    %c0_i32_1 = arith.constant 0 : i32
    return %c0_i32, %c0_i32_0 : i32, i32
  }
  func.func @transform_10(%arg0: i32) -> (i32, i32) {
    %c0_i32 = arith.constant 0 : i32
    %c0_i32_0 = arith.constant 0 : i32
    return %arg0, %c0_i32 : i32, i32
  }
  func.func @transform_11(%arg0: i32) -> (i32, i32) {
    %c0_i32 = arith.constant 0 : i32
    %c0_i32_0 = arith.constant 0 : i32
    %c0_i32_1 = arith.constant 0 : i32
    return %c0_i32, %c0_i32_0 : i32, i32
  }
}

</mosaic_0001>

<bundles_post_ra>
// kernel: tpu_custom_call.1
= control target key start
LH: loop header
LB: loop body
LE: loop exit
PB: predicated region body
PF: predicated region fallthrough
CT: control target
= control target key end

     0   :  { %17 = vsyncpa [#allocation7], 0  ;;  %s1929_s17 = smov 0   ;;  %s2175_s0 = inlined_call_operand.vmem [shape: f32[24,15], index: 0, kind: input, shape index: {}]   ;;  %s2176_s1 = inlined_call_operand.vmem [shape: f32[24,1], index: 1, kind: input, shape index: {}]   ;;  %s2177_s2 = inlined_call_operand.vmem [shape: f32[15,32], index: 2, kind: input, shape index: {}]   ;;  %s2178_s3 = inlined_call_operand.vmem [shape: f32[1,32], index: 3, kind: input, shape index: {}]   ;;  %s2179_s4 = inlined_call_operand.vmem [shape: f32[32,16], index: 4, kind: input, shape index: {}]   ;;  %s2180_s5 = inlined_call_operand.vmem [shape: f32[1,16], index: 5, kind: input, shape index: {}]   ;;  %s2181_s6 = inlined_call_operand.vmem [shape: f32[16,43], index: 6, kind: input, shape index: {}]   ;;  %s2182_s7 = inlined_call_operand.vmem [shape: f32[1,43], index: 7, kind: input, shape index: {}]   ;;  %s2183_s8 = inlined_call_operand.vmem [shape: f32[43,10], index: 8, kind: input, shape index: {}]   ;;  %s2184_s9 = inlined_call_operand.vmem [shape: f32[1,10], index: 9, kind: input, shape index: {}]   ;;  %s2185_s10 = inlined_call_operand.vmem [shape: f32[24,7], index: 10, kind: output, shape index: {0}]   ;;  %s2186_s11 = inlined_call_operand.hbm [shape: f32[1,1], index: 11, kind: output, shape index: {1}]  }
   0x1 LB: > { %s1935_s18 = sadd.s32 4294967295, %s1845_s17   ;;  %p1523_p0 = scmp.ge.s32.totalorder %s1845_s17, 1  ;;  %s1845_s17 = sphi %s1929_s17, %s23_s17  }
   0x2   : > { %p326_p1 = scmp.lt.s32.totalorder %s1845_s17, 4 }
   0x4   : > { %p327_p2 = pnand %p1523_p0, %p326_p1 }
   0x5   : > { %p360_p3 = scmp.lt.s32.totalorder (!%p327_p2), %s1935_s18, 2  ;;  %p1525_p4 = scmp.ne.s32.totalorder (!%p327_p2), %s1935_s18, 0 }
   0x6   : > { %330 = sbr.rel (%p327_p2) target bundleno = 2371 (0x943), region = 60 }
   0xd   : > { %s361_s19 = scalar_select %p360_p3, %s1935_s18, 2 }
   0xe   : > { %368 = sbr.rel (%p1525_p4) target bundleno = 683 (0x2ab), region = 64  ;;  %v372_v0 = vld [vmem:[%s2177_s2] sm:$0xff] (!%p1525_p4)  ;;  %v373_v1 = vld [vmem:[%s2177_s2 + $0x8] sm:$0x7f] (!%p1525_p4)  ;;  %vm391_vm0 = vcmask (!%p1525_p4), 1046528   ;;  %v1847_v2 = vmov (!%p1525_p4), 0.0|0.0   ;;  %v687_v30 = vlaneseq (!%p1525_p4) }
   0xf   : > { %s1524_s20 = sshll.u32 %s361_s19, 3  ;;  %1711 = vmatprep.subr.bf16.mxu0 (!%p1525_p4), %v1847_v2  ;;  %v1712_v3 = vpack.c.bf16 (!%p1525_p4), %v373_v1, %v372_v0  ;;  %vm1848_vm1 = vmmov (!%p1525_p4), 1   ;;  %vm735_vm3 = vcmask (!%p1525_p4), 32768   ;;  %1715 = vmatprep.subr.bf16.mxu1 (!%p1525_p4), %v1847_v2  ;;  %vm1849_vm4 = vmmov (!%p1525_p4), 0   ;;  %v478_v5 = vld [vmem:[%s2179_s4] sm:$0xff] (!%p1525_p4)  ;;  %v479_v6 = vld [vmem:[%s2179_s4 + $0x8] sm:$0xff] (!%p1525_p4) }
  0x10   : > { %s1944_s23 = scalar_lea.vmem %s2185_s10, %s1524_s20  ;;  %vm1713_vm2 = vmpackc.low (!%p1525_p4), %vm391_vm0, %vm1848_vm1  ;;  %v1850_v4 = vmov (!%p1525_p4), 0.0   ;;  %v369_v7 = vld [vmem:[%s2175_s0] sm:$0xff] (!%p1525_p4)  ;;  %vm381_vm5 = vcmask (!%p1525_p4), 121856   ;;  %v1716_v8 = vpack.c.bf16 (!%p1525_p4), %v479_v6, %v478_v5  ;;  %v370_v9 = vld [vmem:[%s2175_s0 + $0x8] sm:$0xff] (!%p1525_p4)  ;;  %vm489_vm6 = vcmask (!%p1525_p4), 261120   ;;  %s1851_s15 = smov (!%p1525_p4), 1  }
  0x11   : > { %1619 = vmatprep.mubr.msk.f32.mxu0 (!%p1525_p4), %vm1849_vm4, %v1850_v4  ;;  %736 = vst.msk [vmem:[#allocation5] sm:$0x1] (!%p1525_p4), %vm735_vm3, %v1850_v4  ;;  %1636 = vmatprep.mubr.msk.f32.mxu1 (!%p1525_p4), %vm1849_vm4, %v1850_v4  ;;  %v371_v10 = vld [vmem:[%s2175_s0 + $0x10] sm:$0xff] (!%p1525_p4)  ;;  %v481_v12 = vld [vmem:[%s2179_s4 + $0x18] sm:$0xff] (!%p1525_p4)  ;;  %v1526_v14 = vld [vmem:[%s2178_s3] ss:$0 sm:$0xff] (!%p1525_p4) }
  0x12   : > { %1714 = vmatpush3.bf16.msk.msra.mxu0 (!%p1525_p4), %vm1713_vm2, %v1712_v3  ;;  %1717 = vmatpush3.bf16.msra.mxu1 (!%p1525_p4), %v1716_v8  ;;  %v480_v11 = vld [vmem:[%s2179_s4 + $0x10] sm:$0xff] (!%p1525_p4)  ;;  %v684_v27 = vld [vmem:[%s2176_s1] sm:$0xff] (!%p1525_p4)  ;;  %v685_v28 = vld [vmem:[%s2176_s1 + $0x8] sm:$0xff] (!%p1525_p4)  ;;  %v688_v33 = vshrl.u32 (!%p1525_p4), %v687_v30, 7  ;;  %vm592_vm11 = vcmask (!%p1525_p4), 60416   ;;  %vm599_vm12 = vcmask (!%p1525_p4), 64512  }
  0x13   : > { %1721 = vmatprep.subr.bf16.mxu0 (!%p1525_p4), %v1847_v2  ;;  %1718 = vmatprep.subr.bf16.mxu1 (!%p1525_p4), %v1847_v2  ;;  %v1719_v13 = vpack.c.bf16 (!%p1525_p4), %v481_v12, %v480_v11  ;;  %v686_v29 = vld [vmem:[%s2176_s1 + $0x10] sm:$0xff] (!%p1525_p4)  ;;  %vm700_vm7 = vcmp.eq.f32.partialorder (!%p1525_p4), %v684_v27, 1.0  ;;  %vm701_vm8 = vcmp.eq.f32.partialorder (!%p1525_p4), %v685_v28, 1.0  ;;  %v1531_v41 = vld [vmem:[%s2180_s5] ss:$0 sm:$0xff] (!%p1525_p4)  ;;  %vm1723_vm13 = vmpackc.low (!%p1525_p4), %vm599_vm12, %vm599_vm12  ;;  %vm727_vm14 = vcmask (!%p1525_p4), 7168  }
  0x14   : > { %v1543_v31 = vsel (!%p1525_p4), %vm700_vm7, 1.0, %v1850_v4  ;;  %v1544_v32 = vsel (!%p1525_p4), %vm701_vm8, 1.0, %v1850_v4  ;;  %vm702_vm9 = vcmp.eq.f32.partialorder (!%p1525_p4), %v686_v29, 1.0  ;;  %v690_v35 = vadd.s32 (!%p1525_p4), 16, %v688_v33 }
  0x15   : > { %1620 = vmatmul.mubr.msk.f32.vlgmr.msra.gmra.mrb[0].mxu0 %vm381_vm5, %v369_v7  ;;  %v712_v34 = vsub.f32 1.0, %v1543_v31  ;;  %v713_v36 = vsub.f32 1.0, %v1544_v32  ;;  %v1545_v37 = vsel %vm702_vm9, 1.0, %v1850_v4  ;;  %vm731_vm15 = vcmask 15360  }
  0x16   : > { %1622 = vmatprep.mubr.msk.f32.mxu0 %vm1849_vm4, %v1850_v4  ;;  %1720 = vmatpush3.bf16.msra.mxu1 %v1719_v13  ;;  %vm693_vm10 = vcmp.lt.s32.totalorder %v690_v35, 20  ;;  %v1852_v0 = vmov 1.0   ;;  %vm682_vm0 = vcmask 188416  }
  0x17   : > { %718 = vrot.lane.b32.xlu0 %v712_v34, %s1851_s15  ;;  %v1542_v38 = vsel %vm693_vm10, 1.0, %v1850_v4 }
  0x18   : > { %v711_v39 = vmul.f32 %v1545_v37, %v1542_v38 }
  0x19   : > { %1623 = vmatmul.mubr.msk.f32.gmra.mrb[2].mxu0 %vm381_vm5, %v370_v9 }
  0x1a   : > { %1625 = vmatprep.mubr.msk.f32.mxu0 %vm1849_vm4, %v1850_v4  ;;  %v714_v40 = vsub.f32 %v1542_v38, %v711_v39 }
  0x1b   : > { %720 = vrot.lane.b32.xlu0 %v713_v36, %s1851_s15 }
  0x1c   : > { %722 = vrot.lane.b32.xlu1 %v714_v40, %s1851_s15 }
  0x1d   : > { %1626 = vmatmul.mubr.msk.f32.gmra.mrb[4].mxu0 %vm381_vm5, %v371_v10 }
  0x1e   : > { %1651 = vmatprep.mubr.msk.f32.mxu0 %vm1849_vm4, %v1850_v4 }
  0x89   : > { %v719_v57 = vpop.permute.xlu0 %718 }
  0x8a   : > { %v728_v58 = vsel %vm727_vm14, %v1543_v31, %v719_v57 }
  0x8b   : > { %732 = vst.msk [vmem:[#allocation4] sm:$0xff] %vm731_vm15, %v728_v58 }
  0x8d   : > { %v721_v60 = vpop.permute.xlu0 %720 }
  0x8e   : > { %v729_v61 = vsel %vm727_vm14, %v1544_v32, %v721_v60  ;;  %v723_v62 = vpop.permute.xlu1 %722 }
  0x8f   : > { %733 = vst.msk [vmem:[#allocation4 + $0x8] sm:$0xff] %vm731_vm15, %v729_v61  ;;  %v730_v63 = vsel %vm727_vm14, %v711_v39, %v723_v62 }
  0x90   : > { %734 = vst.msk [vmem:[#allocation4 + $0x10] sm:$0xff] %vm731_vm15, %v730_v63 }
  0xe8   : > { %v461_v15 = vpop.f32.mrb[0].mxu0 }
  0xe9   : > { %v462_v16 = vadd.f32 %v1526_v14, %v461_v15  ;;  %v1621_v17 = vpop.f32.mrb[1].mxu0 }
  0xeb   : > { %v475_v18 = vmax.f32 %v462_v16, 0.0 }
  0xec   : > { %v466_v19 = vpop.f32.mrb[2].mxu0 }
  0xed   : > { %v467_v20 = vadd.f32 %v1526_v14, %v466_v19  ;;  %v1624_v21 = vpop.f32.mrb[3].mxu0  ;;  %1637 = vmatmul.mubr.msk.f32.vlgmr.msra.gmra.mrb[0].mxu1 %vm489_vm6, %v475_v18 }
  0xee   : > { %1639 = vmatprep.mubr.msk.f32.mxu1 %vm1849_vm4, %v1850_v4 }
  0xef   : > { %v476_v22 = vmax.f32 %v467_v20, 0.0 }
  0xf0   : > { %v471_v23 = vpop.f32.mrb[4].mxu0 }
  0xf1   : > { %1640 = vmatmul.mubr.msk.f32.gmra.mrb[2].mxu1 %vm489_vm6, %v476_v22  ;;  %v472_v24 = vadd.f32 %v1526_v14, %v471_v23  ;;  %v1627_v25 = vpop.f32.mrb[5].mxu0 }
  0xf2   : > { %1642 = vmatprep.mubr.msk.f32.mxu1 %vm1849_vm4, %v1850_v4 }
  0xf3   : > { %v477_v26 = vmax.f32 %v472_v24, 0.0 }
  0xf5   : > { %1643 = vmatmul.mubr.msk.f32.gmra.mrb[4].mxu1 %vm489_vm6, %v477_v26 }
 0x1c0   : > { %v565_v42 = vpop.f32.mrb[0].mxu1 }
 0x1c1   : > { %v566_v43 = vadd.f32 %v1531_v41, %v565_v42  ;;  %v1638_v44 = vpop.f32.mrb[1].mxu1 }
 0x1c3   : > { %v1571_v45 = vpack.c.bf16 %v566_v43, %v566_v43  ;;  %v596_v49 = vmul.f32 %v566_v43, %v566_v43 }
 0x1c4   : > { %v570_v46 = vpop.f32.mrb[2].mxu1 }
 0x1c5   : > { %593 = vst.msk [vmem:[#allocation2] sm:$0xf] %vm592_vm11, %v1571_v45  ;;  %v571_v47 = vadd.f32 %v1531_v41, %v570_v46  ;;  %v1641_v48 = vpop.f32.mrb[3].mxu1 }
 0x1c7   : > { %v1572_v50 = vpack.c.bf16 %v571_v47, %v571_v47  ;;  %v597_v51 = vmul.f32 %v571_v47, %v571_v47 }
 0x1c8   : > { %v575_v52 = vpop.f32.mrb[4].mxu1 }
 0x1c9   : > { %594 = vst.msk [vmem:[#allocation2 + $0x4] sm:$0xf] %vm592_vm11, %v1572_v50  ;;  %v1722_v53 = vpack.c.bf16 %v597_v51, %v596_v49  ;;  %v576_v54 = vadd.f32 %v1531_v41, %v575_v52  ;;  %v1644_v55 = vpop.f32.mrb[5].mxu1 }
 0x1cb   : > { %1724 = vmatpush3.bf16.xpose.msk.msra.mxu0 %vm1723_vm13, %v1722_v53  ;;  %v1573_v56 = vpack.c.bf16 %v576_v54, %v576_v54  ;;  %v598_v59 = vmul.f32 %v576_v54, %v576_v54 }
 0x1cc   : > { %1649 = vmatprep.subr.mxu0 %v1850_v4 }
 0x1cd   : > { %595 = vst.msk [vmem:[#allocation2 + $0x8] sm:$0xf] %vm592_vm11, %v1573_v56 }
 0x1d3   : > { %1650 = vmatpush3.xpose.msk.msra.mxu0 %vm599_vm12, %v598_v59 }
 0x1d6   : > { %1652 = vmatmul.mubr.msk.f32.vlgmr.msra.gmra.mrb[6].mxu0 %vm599_vm12, %v1852_v0 }
 0x2a9   : > { %v678_v1 = vpop.f32.mrb[6].mxu0 }
 0x2aa   : > { %683 = vst.msk [vmem:[#allocation3] sm:$0x1] %vm682_vm0, %v678_v1  ;;  %v1653_v2 = vpop.f32.mrb[7].mxu0 }
 0x2ab PF: > { %v742_v3 = vld [vmem:[%s2177_s2] sm:$0xff]  ;;  %v743_v4 = vld [vmem:[%s2177_s2 + $0x8] sm:$0x7f]  ;;  %vm755_vm1 = vcmask 1046528   ;;  %v1853_v5 = vmov 0.0|0.0   ;;  %vm1854_vm2 = vmmov 1  }
 0x2ac   : > { %1725 = vmatprep.subr.bf16.mxu0 %v1853_v5  ;;  %v1726_v6 = vpack.c.bf16 %v743_v4, %v742_v3  ;;  %vm1727_vm3 = vmpackc.low %vm755_vm1, %vm1854_vm2  ;;  %s2025_s25 = sshll.u32 %s1935_s18, 3  ;;  %1729 = vmatprep.subr.bf16.mxu1 %v1853_v5  ;;  %v830_v7 = vld [vmem:[%s2179_s4] sm:$0xff]  ;;  %v831_v8 = vld [vmem:[%s2179_s4 + $0x8] sm:$0xff]  ;;  %vm1855_vm4 = vmmov 0   ;;  %v1856_v9 = vmov 0.0   ;;  %vm751_vm5 = vcmask 121856  }
 0x2ad   : > { %1658 = vmatprep.mubr.msk.f32.mxu0 %vm1855_vm4, %v1856_v9  ;;  %s738_s13 = scalar_lea.vmem %s2175_s0, %s2025_s25  ;;  %v1730_v10 = vpack.c.bf16 %v831_v8, %v830_v7  ;;  %1669 = vmatprep.mubr.msk.f32.mxu1 %vm1855_vm4, %v1856_v9  ;;  %v832_v12 = vld [vmem:[%s2179_s4 + $0x10] sm:$0xff]  ;;  %v833_v13 = vld [vmem:[%s2179_s4 + $0x18] sm:$0xff]  ;;  %s740_s22 = scalar_lea.vmem %s2176_s1, %s2025_s25  ;;  %v1857_v15 = vmov 0   ;;  %v915_v18 = vld [vmem:[%s2181_s6] sm:$0xff]  ;;  %vm1154_vm6 = vcmask 64512   ;;  %vm841_vm7 = vcmask 261120  }
 0x2ae   : > { %1728 = vmatpush3.bf16.msk.msra.mxu0 %vm1727_vm3, %v1726_v6  ;;  %v739_v11 = vld [vmem:[%s738_s13] sm:$0xff]  ;;  %v1733_v14 = vpack.c.bf16 %v833_v13, %v832_v12  ;;  %1791 = vset.pattern.permute.xlu1 %v1857_v15  ;;  %v916_v19 = vld [vmem:[%s2181_s6 + $0x8] sm:$0xff]  ;;  %v1793_v22 = vld [vmem:[#allocation2] sm:$0xff]   ;;  %vm924_vm8 = vcmask 130048   ;;  %vm1016_vm9 = vcmask 1042432   ;;  %vm1012_vm11 = vcmask 351232  }
 0x2af   : > { %1731 = vmatpush3.bf16.msra.mxu1 %v1730_v10  ;;  %1735 = vmatprep.subr.bf16.mxu0 %v1853_v5  ;;  %v2057_v16 = vld [vmem:[%s740_s22] sm:$0xff]  ;;  %v1736_v20 = vpack.c.bf16 %v916_v19, %v915_v18  ;;  %v1173_v27 = vsel %vm1154_vm6, %v1793_v22, 0  ;;  %v1000_v41 = vld [vmem:[%s2183_s8 + $0x8] sm:$0xff]  ;;  %v1001_v42 = vld [vmem:[%s2183_s8 + $0x10] sm:$0xff]  ;;  %vm1234_vm12 = vcmask 195584   ;;  %vm1090_vm13 = vcmask 15360  }
 0x2b0   : > { %1732 = vmatprep.subr.bf16.mxu1 %v1853_v5  ;;  %1792 = vset.pattern.permute.xlu0 %v1857_v15  ;;  %v1110_v17 = vsub.f32 1.0, %v2057_v16  ;;  %v1547_v21 = vld [vmem:[%s2178_s3] ss:$0 sm:$0xff]  ;;  %v1002_v44 = vld [vmem:[%s2183_s8 + $0x18] sm:$0xff]  ;;  %vm1746_vm10 = vmpackc.low %vm1016_vm9, %vm1854_vm2  ;;  %s1858_s15 = smov 4   ;;  %s1859_s16 = smov 127   ;;  %v1143_v22 = vlaneseq }
 0x2b1   : > { %1659 = vmatmul.mubr.msk.f32.vlgmr.msra.gmra.mrb[0].mxu0 %vm751_vm5, %v739_v11  ;;  %v1794_v28 = vld [vmem:[#allocation2 + $0x8] ss:$0 sps:$4 sm:$0xff]   ;;  %v1742_v45 = vpack.c.bf16 %v1002_v44, %v1001_v42  ;;  %v1004_v47 = vld [vmem:[%s2183_s8 + $0x28] sm:$0x7]  ;;  %v1232_v51 = vld [vmem:[#allocation4 + $0x8] sm:$0xff]  ;;  %vm1122_vm14 = vcmp.eq.f32.partialorder %v2057_v16, 1.0 }
 0x2b2   : > { %1676 = vmatprep.mubr.msk.f32.mxu0 %vm1855_vm4, %v1856_v9  ;;  %1113 = vperm.xlu1 %1791, %v1110_v17   ;;  %v1176_v29 = vsel %vm1154_vm6, %v1794_v28, 0  ;;  %v1550_v30 = vld [vmem:[%s2180_s5] ss:$0 sm:$0xff]  ;;  %v1231_v50 = vld [vmem:[#allocation4] sm:$0xff]  ;;  %v1562_v52 = vld [vmem:[#allocation3] ss:$0 sm:$0xff] }
 0x2b3   : > { %1734 = vmatpush3.bf16.msra.mxu1 %v1733_v14  ;;  %1737 = vmatpush3.bf16.msra.mxu0 %v1736_v20  ;;  %v999_v40 = vld [vmem:[%s2183_s8] sm:$0xff]  ;;  %v1749_v58 = vpack.c.bf16 %v1232_v51, %v1231_v50  ;;  %v1233_v3 = vld [vmem:[#allocation4 + $0x10] sm:$0xff]  ;;  %s1861_s19 = smov 2   ;;  %s1862_s20 = smov 3   ;;  %vm1344_vm0 = vcmask 7168   ;;  %vm1347_vm1 = vcmask 23552  }
 0x2b4   : > { %1694 = vmatprep.subr.bf16.mxu1 %v1856_v9  ;;  %1738 = vmatprep.subr.bf16.mxu0 %v1853_v5  ;;  %v1739_v43 = vpack.c.bf16 %v1000_v41, %v999_v40  ;;  %v1003_v46 = vld [vmem:[%s2183_s8 + $0x20] sm:$0xff]  ;;  %s1863_s21 = smov 122   ;;  %s1864_s22 = smov 6   ;;  %vm1129_vm2 = vcmask 31744   ;;  %vm1351_vm3 = vcmask 39936   ;;  %vm1135_vm5 = vcmask 48160  }
 0x2b5   : > { %v1745_v48 = vpack.c.bf16 %v1004_v47, %v1003_v46  ;;  %v1552_v49 = vld [vmem:[%s2182_s7] ss:$0 sm:$0xff]  ;;  %p1564_p5 = scmp.ne.s32.totalorder %s1935_s18, 2 }
 0x2b6   : > { %v1554_v6 = vld [vmem:[%s2184_s9] ss:$0 sm:$0xff]  ;;  %s1865_s24 = smov (!%p1564_p5), 127   ;;  %s1867_s28 = smov (!%p1564_p5), 126   ;;  %vm1449_vm9 = vcmask (!%p1564_p5), 0  }
 0x331   : > { %v1114_v11 = vpop.permute.xlu1 %1113 }
 0x384   : > { %v825_v23 = vpop.f32.mrb[0].mxu0 }
 0x385   : > { %v826_v24 = vadd.f32 %v1547_v21, %v825_v23  ;;  %v1660_v25 = vpop.f32.mrb[1].mxu0 }
 0x386   : > { %v1144_v25 = vshrl.u32 %v1143_v22, 7 }
 0x387   : > { %v829_v26 = vmax.f32 %v826_v24, 0.0 }
 0x389   : > { %1670 = vmatmul.mubr.msk.f32.vlgmr.msra.gmra.mrb[0].mxu1 %vm841_vm7, %v829_v26  ;;  %v1145_v26 = vstv %s2025_s25  ;;  %s1860_s25 = smov 1  }
 0x38a   : > { %1695 = vmatpush3.bf16.xpose.msra.mxu1 %v1173_v27  ;;  %1698 = vmatprep.mubr.msk.bf16.mxu1 %vm1855_vm4, %v1856_v9 }
 0x38b   : > { %1696 = vmatprep.subr.bf16.mxu1 %v1856_v9 }
 0x392   : > { %1697 = vmatpush3.bf16.xpose.msra.mxu1 %v1176_v29  ;;  %v1146_v29 = vadd.s32 %v1145_v26, %v1144_v25 }
 0x394   : > { %vm1147_vm15 = vcmp.lt.s32.totalorder %v1146_v29, 20 }
 0x45c   : > { %v911_v31 = vpop.f32.mrb[0].mxu1 }
 0x45d   : > { %v912_v32 = vadd.f32 %v1550_v30, %v911_v31  ;;  %v1671_v33 = vpop.f32.mrb[1].mxu1  ;;  %v1557_v31 = vsel %vm1122_vm14, 1.0, %v1856_v9 }
 0x45e   : > { %v1558_v33 = vsel %vm1147_vm15, 1.0, %v1856_v9 }
 0x45f   : > { %v1152_v34 = vpack.c.bf16 %v912_v32, %v912_v32  ;;  %1677 = vmatmul.mubr.msk.f32.vlgmr.msra.gmra.mrb[2].mxu0 %vm924_vm8, %v912_v32  ;;  %v1153_v35 = vmul.f32 %v912_v32, %v912_v32 }
 0x460   : > { %1691 = vmatprep.mubr.msk.f32.mxu0 %vm1855_vm4, %v1856_v9  ;;  %1740 = vmatpush3.bf16.msra.mxu0 %v1739_v43 }
 0x461   : > { %1699 = vmatmul.mubr.msk.bf16.vlgmr.msra.gmra.mrb[4].mxu1 %vm1154_vm6, %v1152_v34  ;;  %v1155_v36 = vsel %vm1154_vm6, %v1153_v35, 0.0  ;;  %v1308_v37 = vunpack.c.l.bf16 %v1152_v34  ;;  %1741 = vmatprep.subr.bf16.mxu0 %v1853_v5  ;;  %v1150_v34 = vmul.f32 %v1558_v33, %v1557_v31 }
 0x462   : > { %1156 = vadd.xlane.f32.xlu0 %v1155_v36 }
 0x463   : > { %v1309_v38 = vmul.f32 %v1308_v37, %v1308_v37  ;;  %v1151_v36 = vsub.f32 %v1558_v33, %v1150_v34 }
 0x464   : > { %1743 = vmatpush3.bf16.msra.mxu0 %v1742_v45 }
 0x465   : > { %v1310_v39 = vsel %vm1154_vm6, %v1309_v38, 0.0  ;;  %1744 = vmatprep.subr.bf16.mxu0 %v1853_v5  ;;  %vm1141_vm6 = vcmask 56368  }
 0x466   : > { %1311 = vadd.xlane.f32.xlu1 %v1310_v39 }
 0x468   : > { %1747 = vmatpush3.bf16.msk.msra.mxu0 %vm1746_vm10, %v1745_v48 }
 0x469   : > { %1748 = vmatprep.subr.bf16.mxu0 %v1853_v5 }
 0x4ef   : > { %v1157_v53 = vpop.xlane.xlu0 %1156 }
 0x4f0   : > { %v1225_v59 = vadd.f32 %v1562_v52, %v1157_v53  ;;  %v1313_v27 = vmul.f32 2.0, %v1157_v53 }
 0x4f3   : > { %v1312_v23 = vpop.xlane.xlu1 %1311 }
 0x4f4   : > { %v1314_v24 = vmul.f32 2.0, %v1312_v23 }
 0x4f6   : > { %v1315_v28 = vsub.f32 %v1313_v27, %v1314_v24 }
 0x4f8   : > { %v1316_v30 = vmul.f32 -1.0, %v1315_v28 }
 0x4fa   : > { %v1317_v32 = vmul.f32 1.442695, %v1316_v30 }
 0x532   : > { %v994_v54 = vpop.f32.mrb[2].mxu0 }
 0x533   : > { %v995_v55 = vadd.f32 %v1552_v49, %v994_v54  ;;  %v1678_v56 = vpop.f32.mrb[3].mxu0 }
 0x534   : > { %v1212_v57 = vpop.f32.mrb[4].mxu1 }
 0x535   : > { %v998_v60 = vmax.f32 %v995_v55, 0.0  ;;  %v1226_v61 = vmul.f32 2.0, %v1212_v57  ;;  %v1700_v62 = vpop.f32.mrb[5].mxu1 }
 0x536   : > { %v1215_v63 = vpop.f32.mrb[6].mxu1 }
 0x537   : > { %v1227_v0 = vsub.f32 %v1225_v59, %v1226_v61  ;;  %1692 = vmatmul.mubr.msk.f32.vlgmr.msra.gmra.mrb[4].mxu0 %vm1012_vm11, %v998_v60  ;;  %v1701_v1 = vpop.f32.mrb[7].mxu1 }
 0x538   : > { %1750 = vmatpush3.bf16.msra.mxu0 %v1749_v58  ;;  %1708 = vmatprep.mubr.msk.f32.mxu0 %vm1855_vm4, %v1856_v9  ;;  %vm1360_vm4 = vcmask 32768  }
 0x539   : > { %v1228_v2 = vmul.f32 -1.0, %v1227_v0  ;;  %1706 = vmatprep.subr.mxu0 %v1856_v9  ;;  %v1350_v0 = vld [vmem:[#allocation5] sm:$0x1] }
 0x53b   : > { %v1229_v4 = vmul.f32 1.442695, %v1228_v2 }
 0x53c   : > { %1707 = vmatpush3.msra.mxu0 %v1233_v3 }
 0x53d   : > { %1795 = vpow2.f32 %v1229_v4 }
 0x547   : > { %v1796_v5 = vpop.eup %1795 }
 0x548   : > { %1709 = vmatmul.mubr.msk.f32.vlgmr.msra.gmra.mrb[6].mxu0 %vm1234_vm12, %v1796_v5 }
 0x60a   : > { %v1086_v7 = vpop.f32.mrb[4].mxu0 }
 0x60b   : > { %v2114_v8 = vadd.f32 %v1554_v6, %v1086_v7  ;;  %v1693_v10 = vpop.f32.mrb[5].mxu0  ;;  %v1367_v6 = vld [vmem:[#allocation4] sm:$0xff] (!%p1564_p5)  ;;  %v1369_v7 = vld [vmem:[#allocation4 + $0x10] sm:$0xff] (!%p1564_p5) }
 0x60c   : > { %v1370_v10 = vsel (!%p1564_p5), %vm1344_vm0, %v1367_v6, 0.0 }
 0x60d   : > { %v1091_v12 = vsel %vm1090_vm13, %v2114_v8, -inf  ;;  %v1116_v13 = vmul.f32 %v1114_v11, %v2114_v8 }
 0x60e   : > { %1092 = vmax.xlane.f32.xlu0 %v1091_v12 }
 0x60f   : > { %1118 = vrot.lane.b32.xlu1 %v1116_v13, %s1858_s15  ;;  %v1373_v13 = vsel (!%p1564_p5), %vm1344_vm0, %v1369_v7, 0.0 }
 0x61b   : > { %v1304_v14 = vpop.f32.mrb[6].mxu0 }
 0x61c   : > { %v1710_v15 = vpop.f32.mrb[7].mxu0  ;;  %v1319_v51 = vmul.f32 %v1304_v14, %v1150_v34 }
 0x624   : > { %1321 = vrot.lane.b32.xlu0 %v1304_v14, %s1859_s16 }
 0x681   : > { %v1119_v44 = vpop.permute.xlu1 %1118 }
 0x69b   : > { %v1093_v17 = vpop.xlane.xlu0 %1092 }
 0x69c   : > { %v1094_v18 = vsub.f32 %v2114_v8, %v1093_v17 }
 0x69e   : > { %v1095_v19 = vmul.f32 1.442695, %v1094_v18 }
 0x69f   : > { %v1322_v35 = vpop.permute.xlu0 %1321 }
 0x6a0   : > { %1797 = vpow2.f32 %v1095_v19  ;;  %v1324_v37 = vmul.f32 %v1322_v35, %v1151_v36  ;;  %v1325_v38 = vmul.f32 %v1322_v35, %v1150_v34 }
 0x6a1   : > { %1799 = vpow2.f32 %v1317_v32 }
 0x6aa   : > { %v1798_v20 = vpop.eup %1797 }
 0x6ab   : > { %v1097_v21 = vsel %vm1090_vm13, %v1798_v20, 0.0  ;;  %v1800_v39 = vpop.eup %1799 }
 0x6ac   : > { %1098 = vadd.xlane.f32.xlu0 %v1097_v21  ;;  %v1326_v40 = vmul.f32 %v1800_v39, %v1150_v34  ;;  %v1327_v41 = vmul.f32 %v1800_v39, %v1151_v36 }
 0x6c2   : > { %1106 = vperm.xlu0 %1792, %v2057_v16  }
 0x6c6   : > { %1329 = vrot.lane.b32.xlu0 %v1324_v37, %s1860_s25 }
 0x6ca   : > { %1333 = vrot.lane.b32.xlu0 %v1325_v38, %s1861_s19 }
 0x6ce   : > { %1337 = vrot.lane.b32.xlu0 %v1326_v40, %s1862_s20 }
 0x6d2   : > { %1341 = vrot.lane.b32.xlu0 %v1327_v41, %s1858_s15 }
 0x739   : > { %v1099_v9 = vpop.xlane.xlu0 %1098 }
 0x73a   : > { %1801 = vlog2.f32 %v1099_v9 }
 0x741   : > { %v1107_v42 = vpop.permute.xlu0 %1106 }
 0x742   : > { %v1109_v43 = vmul.f32 %v1107_v42, %v2114_v8 }
 0x744   : > { %v1802_v16 = vpop.eup %1801  ;;  %v1121_v45 = vadd.f32 %v1119_v44, %v1109_v43 }
 0x745   : > { %v1101_v46 = vmul.f32 0.6931472, %v1802_v16  ;;  %v1330_v47 = vpop.permute.xlu0 %1329 }
 0x746   : > { %1126 = vrot.lane.b32.xlu1 %v1121_v45, %s1863_s21  ;;  %v1345_v53 = vsel %vm1344_vm0, %v1319_v51, %v1330_v47 }
 0x747   : > { %v1102_v48 = vadd.f32 %v1101_v46, %v1093_v17 }
 0x749   : > { %v1334_v49 = vpop.permute.xlu0 %1333  ;;  %v1103_v50 = vsub.f32 %v2114_v8, %v1102_v48  ;;  %v1368_v8 = vld [vmem:[#allocation4 + $0x8] sm:$0xff] (!%p1564_p5) }
 0x74a   : > { %1138 = vrot.lane.b32.xlu1 %v1557_v31, %s1864_s22  ;;  %v1346_v54 = vsel %vm1090_vm13, %v1345_v53, %v1334_v49  ;;  %v1371_v11 = vsel (!%p1564_p5), %vm1344_vm0, %v1368_v8, 0.0 }
 0x74b   : > { %1132 = vrot.lane.b32.xlu0 %v1103_v50, %s1858_s15  ;;  %v1372_v12 = vadd.f32 (!%p1564_p5), %v1371_v11, %v1370_v10 }
 0x74d   : > { %v1338_v52 = vpop.permute.xlu0 %1337  ;;  %v1374_v14 = vadd.f32 (!%p1564_p5), %v1373_v13, %v1372_v12 }
 0x74e   : > { %v1348_v55 = vsel %vm1347_vm1, %v1346_v54, %v1338_v52  ;;  %1392 = vrot.lane.b32.xlu1 (!%p1564_p5), %v1369_v7, %s1865_s24 }
 0x74f   : > { %1388 = vrot.lane.b32.xlu0 (!%p1564_p5), %v1367_v6, %s1865_s24 }
 0x751   : > { %v1342_v56 = vpop.permute.xlu0 %1341 }
 0x752   : > { %v1349_v57 = vsel %vm1129_vm2, %v1348_v55, %v1342_v56 }
 0x753   : > { %v1352_v58 = vsel %vm1351_vm3, %v1349_v57, 0.0  ;;  %1390 = vrot.lane.b32.xlu0 (!%p1564_p5), %v1368_v8, %s1865_s24 }
 0x754   : > { %v1353_v59 = vrot.slane %v1352_v58, 4 }
 0x756   : > { %v1354_v60 = vadd.f32 %v1353_v59, %v1352_v58 }
 0x758   : > { %v1355_v61 = vrot.slane %v1354_v60, 2 }
 0x75a   : > { %v1356_v62 = vadd.f32 %v1355_v61, %v1354_v60 }
 0x75c   : > { %v1357_v63 = vrot.slane %v1356_v62, 1 }
 0x75e   : > { %v1358_v1 = vadd.f32 %v1357_v63, %v1356_v62 }
 0x760   : > { %v1359_v2 = vadd.f32 %v1358_v1, %v1350_v0 }
 0x762   : > { %1361 = vst.msk [vmem:[#allocation5] sm:$0x1] %vm1360_vm4, %v1359_v2 }
 0x769   : > { %v1366_v24 = vld [vmem:[#allocation5] sm:$0x1] (!%p1564_p5) }
 0x772   : > { %1375 = vadd.xlane.f32.xlu1 (!%p1564_p5), %v1374_v14 }
 0x7b8   : > { %v1127_v3 = vpop.permute.xlu1 %1126 }
 0x7b9   : > { %1130 = vst.msk [vmem:[%s1944_s23] sm:$0xff] %vm1129_vm2, %v1127_v3  ;;  %1365 = sbr.rel (%p1564_p5) target bundleno = 2346 (0x92a), region = 68 }
 0x7bc   : > { %v1139_v4 = vpop.permute.xlu1 %1138 }
 0x7bd   : > { %v1133_v5 = vpop.permute.xlu0 %1132 }
 0x7be   : > { %1136 = vst.msk [vmem:[%s1944_s23] sm:$0xff] %vm1135_vm5, %v1133_v5 }
 0x7bf   : > { %1142 = vst.msk [vmem:[%s1944_s23] sm:$0xff] %vm1141_vm6, %v1139_v4  ;;  %s1866_s23 = smov (!%p1564_p5), 125  }
 0x7c0   : > { %v1393_v17 = vpop.permute.xlu1 %1392 }
 0x7c1   : > { %v1389_v15 = vpop.permute.xlu0 %1388  ;;  %v1400_v21 = vsel %vm1344_vm0, %v1393_v17, 0.0 }
 0x7c2   : > { %v1397_v19 = vsel %vm1344_vm0, %v1389_v15, 0.0 }
 0x7c5   : > { %v1391_v18 = vpop.permute.xlu0 %1390 }
 0x7c6   : > { %v1398_v20 = vsel %vm1344_vm0, %v1391_v18, 0.0 }
 0x7c7   : > { %v1399_v22 = vadd.f32 %v1398_v20, %v1397_v19 }
 0x7c9   : > { %v1401_v23 = vadd.f32 %v1400_v21, %v1399_v22 }
 0x7cb   : > { %1402 = vadd.xlane.f32.xlu0 %v1401_v23 }
 0x7e1   : > { %1423 = vrot.lane.b32.xlu0 %v1366_v24, %s1866_s23 }
 0x7ff   : > { %v1376_v25 = vpop.xlane.xlu1 %1375 }
 0x800   : > { %v1377_v26 = vrot.slane %v1376_v25, 4 }
 0x802   : > { %v1378_v27 = vadd.f32 %v1377_v26, %v1376_v25 }
 0x804   : > { %v1379_v28 = vrot.slane %v1378_v27, 2 }
 0x806   : > { %v1380_v29 = vadd.f32 %v1379_v28, %v1378_v27 }
 0x808   : > { %v1381_v30 = vrot.slane %v1380_v29, 1 }
 0x80a   : > { %v1382_v31 = vadd.f32 %v1381_v30, %v1380_v29 }
 0x80c   : > { %1751 = vpush %v1382_v31 }
 0x83d   : > { %s1752_s26 = spop %1751 }
 0x83e   : > { %v1384_v39 = vstv %s1752_s26 }
 0x83f   : > { %v1565_v52 = vadd.f32 -1.0, %v1384_v39  ;;  %vm1445_vm8 = vcmp.lt.f32.partialorder %v1384_v39, 2.0 }
 0x841   : > { %v1413_v53 = vmul.f32 %v1565_v52, %v1384_v39 }
 0x843   : > { %v1414_v54 = vmax.f32 %v1413_v53, 1.0 }
 0x858   : > { %v1403_v32 = vpop.xlane.xlu0 %1402 }
 0x859   : > { %v1404_v33 = vrot.slane %v1403_v32, 4 }
 0x85b   : > { %v1405_v34 = vadd.f32 %v1404_v33, %v1403_v32 }
 0x85c   : > { %v1424_v16 = vpop.permute.xlu0 %1423 }
 0x85d   : > { %v1406_v35 = vrot.slane %v1405_v34, 2  ;;  %v1426_v48 = vsub.f32 %v1366_v24, %v1424_v16 }
 0x85f   : > { %v1407_v36 = vadd.f32 %v1406_v35, %v1405_v34 }
 0x861   : > { %v1408_v37 = vrot.slane %v1407_v36, 1 }
 0x863   : > { %v1409_v38 = vadd.f32 %v1408_v37, %v1407_v36 }
 0x865   : > { %1753 = vpush %v1409_v38 }
 0x896   : > { %s1754_s27 = spop %1753 }
 0x897   : > { %v1411_v40 = vstv %s1754_s27 }
 0x898   : > { %v1566_v41 = vadd.f32 -1.0, %v1411_v40  ;;  %v1418_v9 = vmul.f32 %v1411_v40, %v1384_v39  ;;  %vm1446_vm7 = vcmp.lt.f32.partialorder %v1411_v40, 2.0 }
 0x899   : > { %vm1447_vm10 = vmor %vm1445_vm8, %vm1446_vm7 }
 0x89a   : > { %v1416_v42 = vmul.f32 %v1566_v41, %v1411_v40  ;;  %v1419_v43 = vmax.f32 %v1418_v9, 1.0 }
 0x89c   : > { %v1417_v44 = vmax.f32 %v1416_v42, 1.0  ;;  %1803 = vrcp.f32 %v1419_v43 }
 0x89e   : > { %1805 = vrcp.f32 %v1417_v44 }
 0x89f   : > { %1807 = vrcp.f32 %v1414_v54 }
 0x8a6   : > { %v1804_v45 = vpop.eup %1803 }
 0x8a7   : > { %v1437_v50 = vmul.f32 0.5, %v1804_v45 }
 0x8a8   : > { %v1806_v46 = vpop.eup %1805 }
 0x8a9   : > { %v1429_v47 = vmul.f32 0.25, %v1806_v46  ;;  %v1438_v51 = vmul.f32 %v1437_v50, %v1366_v24  ;;  %v1808_v55 = vpop.eup %1807 }
 0x8aa   : > { %v1421_v56 = vmul.f32 0.25, %v1808_v55 }
 0x8ab   : > { %v1430_v49 = vmul.f32 %v1429_v47, %v1426_v48 }
 0x8ac   : > { %v1427_v58 = vmul.f32 %v1426_v48, %v1421_v56 }
 0x8ad   : > { %1432 = vrot.lane.b32.xlu1 %v1430_v49, %s1865_s24 }
 0x8b1   : > { %1440 = vrot.lane.b32.xlu1 %v1438_v51, %s1867_s28 }
 0x91f   : > { %v1433_v57 = vpop.permute.xlu1 %1432 }
 0x920   : > { %v1435_v59 = vadd.f32 %v1433_v57, %v1427_v58 }
 0x923   : > { %v1441_v60 = vpop.permute.xlu1 %1440 }
 0x924   : > { %v1443_v61 = vsub.f32 %v1435_v59, %v1441_v60 }
 0x926   : > { %v1444_v62 = vmul.f32 4.0, %v1443_v61 }
 0x928   : > { %v1448_v63 = vsel %vm1447_vm10, 0.0, %v1444_v62 }
 0x929   : > { %1450 = vst.msk [vmem:[#allocation6] sm:$0x1] %vm1449_vm9, %v1448_v63 }
 0x92a PF: > { %p1759_p6 = scmp.eq.s32.totalorder %s1935_s18, 2  ;;  %s1868_s29 = smov [#allocation6]  }
 0x92b   : > { %s1465_s30 = sshll.u32 %s1868_s29, 4  ;;  %s1466_s30 = int_to_ptr.vmem [resolvable:$true] %s1465_s30 }
 0x92c   : > { %s1809_s12 = scalar_lea.vmem %s1466_s30, 16  ;;  %s1815_s13 = scalar_lea.vmem %s1466_s30, 32 }
 0x92d   : > { %p1810_p7 = scmp.ne.s32.totalorder %s1466_s30, %s1809_s12  ;;  %p1816_p10 = scmp.lt.s32.totalorder %s1466_s30, %s1466_s30 }
 0x92e   : > { %p1817_p11 = scmp.lt.s32.totalorder %s1815_s13, %s1809_s12 }
 0x92f   : > { %p1811_p8 = pnand %p1810_p7, %p1759_p6 }
 0x930   : > { %p1818_p12 = por %p1817_p11, %p1816_p10 }
 0x931   : > { %p1812_p9 = pneg %p1811_p8 }
 0x933   : > { %p1819_p13 = pnand %p1818_p12, %p1812_p9 }
 0x935   : > { %1822 = shalt.err (!%p1819_p13)
}
 0x936   : > { %s1823_s16 = scalar_lea.hbm %s2186_s11, 16 }
 0x937   : > { %p1824_p0 = scmp.ne.s32.totalorder %s2186_s11, %s1823_s16  ;;  %p1829_p3 = scmp.lt.u32.totalorder %s1823_s16, %s2186_s11 }
 0x939   : > { %p1825_p1 = pnand %p1824_p0, %p1759_p6 }
 0x93b   : > { %p1826_p2 = pneg %p1825_p1 }
 0x93d   : > { %p1831_p4 = pnand %p1829_p3, %p1826_p2 }
 0x93f   : > { %1834 = shalt.err (!%p1831_p4)
}
 0x940   : > { %1756 = dma.vmem_to_hbm [thread:$0]  (%p1759_p6), %s1466_s30, 16, %s2186_s11, [#allocation7]  }
 0x941   : > { %1840 = dma.done.wait (%p1759_p6), [#allocation7], 16  }
 0x942   : > { %1842 = vsyncadd (%p1759_p6), [#allocation7], 4294967280 }
 0x943 PF: > { %s23_s17 = sadd.s32 1, %s1845_s17  }
 0x944   : > { %p20_p5 = scmp.ge.s32.totalorder %s23_s17, 5  }
 0x946   :  { %22 = sbr.rel (!%p20_p5) target bundleno = 1 (0x1), region = 106 }
 0x94d   :  { %1485 = vsyncpa [#allocation7], 1 }
 0x94e   :  { %1487 = vsyncpa [#allocation7 + $0x1], 1 }

</bundles_post_ra>
